<compile_context>
chip_gen: v5e
topology: v5e:2x2
jax: 0.10.0
libtpu: 0.0.40
codegen_flags: <defaults>
</compile_context>

<pallas_src>
import jax
import jax.numpy as jnp
from jax import lax
from jax.experimental import pallas as pl
from jax.experimental.pallas import tpu as pltpu

EPS = 1e-5
SQRT2 = 1.4142135623730951
LANE = 128


def _gelu_exact(x):
    # PyTorch nn.GELU() default: exact erf-based GELU.
    return 0.5 * x * (1.0 + lax.erf(x / SQRT2))


def predictor_kernel(emb_ref, w1_ref, w2_ref, w3_ref, b12_ref, b3_ref, out_ref):
    x = emb_ref[...]

    # Block 1: (BN-folded) Linear -> GELU
    h = jnp.dot(x, w1_ref[...], preferred_element_type=jnp.float32) + b12_ref[0:1, :]
    h = _gelu_exact(h)

    # Block 2: (BN-folded) Linear -> GELU
    h = jnp.dot(h, w2_ref[...], preferred_element_type=jnp.float32) + b12_ref[1:2, :]
    h = _gelu_exact(h)

    # Output head: Linear(hidden -> feature_size padded to 128 lanes).
    out_ref[...] = (
        jnp.dot(h, w3_ref[...], preferred_element_type=jnp.float32) + b3_ref[...]
    ).astype(out_ref.dtype)


def _fold_bn(w, b, gamma, beta, mean, var):
    """Fold eval-mode BatchNorm1d into the preceding Linear (per output col)."""
    scale = gamma * lax.rsqrt(var + EPS)          # (1, H)
    w_f = w * scale                               # (in, H) scaled column-wise
    b_f = (b - mean) * scale + beta               # (1, H)
    return w_f, b_f


def predictor_forward(indices, vectors, params, *, tile_b=256):
    """indices: (B,) int32 word ids; vectors: (V, E) float32 frozen embeddings."""
    # TODO(synk): for large vocab/batch, move this gather into the kernel via
    # PrefetchScalarGridSpec(num_scalar_prefetch=1) + manual DMA gather from
    # `vectors` kept in pl.ANY, to avoid the extra HBM round-trip.
    emb = jnp.take(vectors, indices, axis=0).astype(jnp.float32)
    B, E = emb.shape
    H = params["w1"].shape[1]
    F = params["w3"].shape[1]

    # --- BN folding (done once in plain JAX, outside the hot kernel) ---
    w1f, b1f = _fold_bn(params["w1"], params["b1"], params["g1"],
                        params["be1"], params["m1"], params["v1"])
    w2f, b2f = _fold_bn(params["w2"], params["b2"], params["g2"],
                        params["be2"], params["m2"], params["v2"])
    b12 = jnp.concatenate([b1f, b2f], axis=0)     # (2, H): one BlockSpec for both

    # --- Lane-pad the F=1 head to 128 output columns (unmasked stores) ---
    f_pad = ((F + LANE - 1) // LANE) * LANE
    w3p = jnp.zeros((H, f_pad), jnp.float32).at[:, :F].set(params["w3"])
    b3p = jnp.zeros((1, f_pad), jnp.float32).at[:, :F].set(params["b3"])

    # --- Batch tiling ---
    n_tiles = pl.cdiv(B, tile_b)
    b_pad = n_tiles * tile_b
    if b_pad != B:
        emb = jnp.pad(emb, ((0, b_pad - B), (0, 0)))

    out_padded = pl.pallas_call(
        predictor_kernel,
        out_shape=jax.ShapeDtypeStruct((b_pad, f_pad), jnp.float32),
        grid=(n_tiles,),
        in_specs=[
            pl.BlockSpec((tile_b, E), lambda i: (i, 0)),   # emb: tiled over batch
            pl.BlockSpec((E, H), lambda i: (0, 0)),        # w1': VMEM-resident
            pl.BlockSpec((H, H), lambda i: (0, 0)),        # w2': VMEM-resident
            pl.BlockSpec((H, f_pad), lambda i: (0, 0)),    # w3 padded: resident
            pl.BlockSpec((2, H), lambda i: (0, 0)),        # stacked b1'/b2'
            pl.BlockSpec((1, f_pad), lambda i: (0, 0)),    # b3 padded
        ],
        out_specs=pl.BlockSpec((tile_b, f_pad), lambda i: (i, 0)),
        compiler_params=pltpu.CompilerParams(
            dimension_semantics=("parallel",),             # megacore-shardable
        ),
    )(emb, w1f, w2f, w3p, b12, b3p)

    return out_padded[:B, :F]


def make_params(key, embed_dim, hidden, feature_size):
    ks = jax.random.split(key, 6)
    p = {}
    p["w1"] = jax.random.normal(ks[0], (embed_dim, hidden), jnp.float32) * 0.1
    p["b1"] = jnp.zeros((1, hidden), jnp.float32)
    p["g1"] = jnp.ones((1, hidden), jnp.float32)
    p["be1"] = jnp.zeros((1, hidden), jnp.float32)
    p["m1"] = jax.random.normal(ks[3], (1, hidden), jnp.float32) * 0.01  # running_mean
    p["v1"] = jnp.ones((1, hidden), jnp.float32) * 1.1                   # running_var

    p["w2"] = jax.random.normal(ks[1], (hidden, hidden), jnp.float32) * 0.1
    p["b2"] = jnp.zeros((1, hidden), jnp.float32)
    p["g2"] = jnp.ones((1, hidden), jnp.float32) * 0.9
    p["be2"] = jnp.zeros((1, hidden), jnp.float32)
    p["m2"] = jax.random.normal(ks[4], (1, hidden), jnp.float32) * 0.01
    p["v2"] = jnp.ones((1, hidden), jnp.float32) * 0.95

    p["w3"] = jax.random.normal(ks[2], (hidden, feature_size), jnp.float32) * 0.1
    p["b3"] = jnp.zeros((1, feature_size), jnp.float32)
    return p


if __name__ == "__main__":
    key = jax.random.PRNGKey(0)
    k_vec, k_idx, k_par = jax.random.split(key, 3)

    vocab, embed_dim, hidden, feature_size = 64, 32, 32, 1
    batch = 200            # 2 batch tiles of 128 (exercises tiling + padding)
    tile_b = 128

    vectors = jax.random.normal(k_vec, (vocab, embed_dim), jnp.float32)
    indices = jax.random.randint(k_idx, (batch,), 0, vocab, jnp.int32)
    params = make_params(k_par, embed_dim, hidden, feature_size)

    out = predictor_forward(indices, vectors, params, tile_b=tile_b)
    jax.block_until_ready(out)

    # Pure-JAX reference (unfolded BN, exact GELU) to check the kernel math.
    emb = jnp.take(vectors, indices, axis=0)
    h = emb @ params["w1"] + params["b1"]
    h = (h - params["m1"]) * (params["g1"] / jnp.sqrt(params["v1"] + EPS)) + params["be1"]
    h = 0.5 * h * (1.0 + lax.erf(h / SQRT2))
    h = h @ params["w2"] + params["b2"]
    h = (h - params["m2"]) * (params["g2"] / jnp.sqrt(params["v2"] + EPS)) + params["be2"]
    h = 0.5 * h * (1.0 + lax.erf(h / SQRT2))
    ref = h @ params["w3"] + params["b3"]

    assert out.shape == (batch, feature_size)
    assert jnp.allclose(out, ref, atol=1e-4, rtol=1e-4), float(jnp.max(jnp.abs(out - ref)))
    print("KERNEL_OK")
</pallas_src>

<mosaic_0001>
module attributes {stable_mosaic.version = 11 : i64} {
  func.func @predictor_kernel(%arg0: i32, %arg1: memref<128x32xf32, #tpu.memory_space<vmem>>, %arg2: memref<32x32xf32, #tpu.memory_space<vmem>>, %arg3: memref<32x32xf32, #tpu.memory_space<vmem>>, %arg4: memref<32x128xf32, #tpu.memory_space<vmem>>, %arg5: memref<2x32xf32, #tpu.memory_space<vmem>>, %arg6: memref<1x128xf32, #tpu.memory_space<vmem>>, %arg7: memref<128x128xf32, #tpu.memory_space<vmem>>) attributes {dimension_semantics = [#tpu.dimension_semantics<parallel>], iteration_bounds = array<i64: 2>, scalar_prefetch = 0 : i64, scratch_operands = 0 : i64, tpu.core_type = #tpu.core_type<tc>, window_params = [{transform_indices = @transform_0, window_bounds = array<i64: 128, 32>}, {pipeline_mode = #tpu.pipeline_mode<synchronous>, transform_indices = @transform_1, window_bounds = array<i64: 32, 32>}, {pipeline_mode = #tpu.pipeline_mode<synchronous>, transform_indices = @transform_2, window_bounds = array<i64: 32, 32>}, {pipeline_mode = #tpu.pipeline_mode<synchronous>, transform_indices = @transform_3, window_bounds = array<i64: 32, 128>}, {pipeline_mode = #tpu.pipeline_mode<synchronous>, transform_indices = @transform_4, window_bounds = array<i64: 2, 32>}, {pipeline_mode = #tpu.pipeline_mode<synchronous>, transform_indices = @transform_5, window_bounds = array<i64: 1, 128>}, {transform_indices = @transform_6, window_bounds = array<i64: 128, 128>}]} {
    %c0 = arith.constant 0 : index
    %c0_0 = arith.constant 0 : index
    %0 = vector.load %arg1[%c0, %c0_0] : memref<128x32xf32, #tpu.memory_space<vmem>>, vector<128x32xf32>
    %c0_1 = arith.constant 0 : index
    %c0_2 = arith.constant 0 : index
    %1 = vector.load %arg2[%c0_1, %c0_2] : memref<32x32xf32, #tpu.memory_space<vmem>>, vector<32x32xf32>
    %cst = arith.constant dense<0.000000e+00> : vector<128x32xf32>
    %2 = tpu.matmul %0, %1, %cst {dimension_numbers = #tpu.dot_dimension_numbers<[1], [0], [0], [1], [0, 0, 1, 1], [], []>} : vector<128x32xf32>, vector<32x32xf32>, vector<128x32xf32> -> vector<128x32xf32>
    %c0_3 = arith.constant 0 : index
    %c0_4 = arith.constant 0 : index
    %3 = vector.load %arg5[%c0_3, %c0_4] : memref<2x32xf32, #tpu.memory_space<vmem>>, vector<1x32xf32>
    %4 = vector.broadcast %3 : vector<1x32xf32> to vector<128x32xf32>
    %5 = arith.addf %2, %4 : vector<128x32xf32>
    %cst_5 = arith.constant 5.000000e-01 : f32
    %6 = vector.broadcast %cst_5 : f32 to vector<128x32xf32>
    %7 = arith.mulf %6, %5 : vector<128x32xf32>
    %cst_6 = arith.constant 1.41421354 : f32
    %8 = vector.broadcast %cst_6 : f32 to vector<128x32xf32>
    %9 = arith.divf %5, %8 : vector<128x32xf32>
    %10 = math.erf %9 : vector<128x32xf32>
    %cst_7 = arith.constant 1.000000e+00 : f32
    %11 = vector.broadcast %cst_7 : f32 to vector<128x32xf32>
    %12 = arith.addf %11, %10 : vector<128x32xf32>
    %13 = arith.mulf %7, %12 : vector<128x32xf32>
    %c0_8 = arith.constant 0 : index
    %c0_9 = arith.constant 0 : index
    %14 = vector.load %arg3[%c0_8, %c0_9] : memref<32x32xf32, #tpu.memory_space<vmem>>, vector<32x32xf32>
    %cst_10 = arith.constant dense<0.000000e+00> : vector<128x32xf32>
    %15 = tpu.matmul %13, %14, %cst_10 {dimension_numbers = #tpu.dot_dimension_numbers<[1], [0], [0], [1], [0, 0, 1, 1], [], []>} : vector<128x32xf32>, vector<32x32xf32>, vector<128x32xf32> -> vector<128x32xf32>
    %c1 = arith.constant 1 : index
    %c0_11 = arith.constant 0 : index
    %16 = vector.load %arg5[%c1, %c0_11] : memref<2x32xf32, #tpu.memory_space<vmem>>, vector<1x32xf32>
    %17 = vector.broadcast %16 : vector<1x32xf32> to vector<128x32xf32>
    %18 = arith.addf %15, %17 : vector<128x32xf32>
    %cst_12 = arith.constant 5.000000e-01 : f32
    %19 = vector.broadcast %cst_12 : f32 to vector<128x32xf32>
    %20 = arith.mulf %19, %18 : vector<128x32xf32>
    %cst_13 = arith.constant 1.41421354 : f32
    %21 = vector.broadcast %cst_13 : f32 to vector<128x32xf32>
    %22 = arith.divf %18, %21 : vector<128x32xf32>
    %23 = math.erf %22 : vector<128x32xf32>
    %cst_14 = arith.constant 1.000000e+00 : f32
    %24 = vector.broadcast %cst_14 : f32 to vector<128x32xf32>
    %25 = arith.addf %24, %23 : vector<128x32xf32>
    %26 = arith.mulf %20, %25 : vector<128x32xf32>
    %c0_15 = arith.constant 0 : index
    %c0_16 = arith.constant 0 : index
    %27 = vector.load %arg4[%c0_15, %c0_16] : memref<32x128xf32, #tpu.memory_space<vmem>>, vector<32x128xf32>
    %cst_17 = arith.constant dense<0.000000e+00> : vector<128x128xf32>
    %28 = tpu.matmul %26, %27, %cst_17 {dimension_numbers = #tpu.dot_dimension_numbers<[1], [0], [0], [1], [0, 0, 1, 1], [], []>} : vector<128x32xf32>, vector<32x128xf32>, vector<128x128xf32> -> vector<128x128xf32>
    %c0_18 = arith.constant 0 : index
    %c0_19 = arith.constant 0 : index
    %29 = vector.load %arg6[%c0_18, %c0_19] : memref<1x128xf32, #tpu.memory_space<vmem>>, vector<1x128xf32>
    %30 = vector.broadcast %29 : vector<1x128xf32> to vector<128x128xf32>
    %31 = arith.addf %28, %30 : vector<128x128xf32>
    %c0_20 = arith.constant 0 : index
    %c0_21 = arith.constant 0 : index
    %32 = vector.load %arg7[%c0_20, %c0_21] : memref<128x128xf32, #tpu.memory_space<vmem>>, vector<128x128xf32>
    tpu.vector_store %arg7[%c0_20, %c0_21], %31 {strides = array<i32>} : memref<128x128xf32, #tpu.memory_space<vmem>>, vector<128x128xf32>,
    return
  }
  func.func @transform_0(%arg0: i32) -> (i32, i32) {
    %c0_i32 = arith.constant 0 : i32
    %c0_i32_0 = arith.constant 0 : i32
    return %arg0, %c0_i32 : i32, i32
  }
  func.func @transform_1(%arg0: i32) -> (i32, i32) {
    %c0_i32 = arith.constant 0 : i32
    %c0_i32_0 = arith.constant 0 : i32
    %c0_i32_1 = arith.constant 0 : i32
    return %c0_i32, %c0_i32_0 : i32, i32
  }
  func.func @transform_2(%arg0: i32) -> (i32, i32) {
    %c0_i32 = arith.constant 0 : i32
    %c0_i32_0 = arith.constant 0 : i32
    %c0_i32_1 = arith.constant 0 : i32
    return %c0_i32, %c0_i32_0 : i32, i32
  }
  func.func @transform_3(%arg0: i32) -> (i32, i32) {
    %c0_i32 = arith.constant 0 : i32
    %c0_i32_0 = arith.constant 0 : i32
    %c0_i32_1 = arith.constant 0 : i32
    return %c0_i32, %c0_i32_0 : i32, i32
  }
  func.func @transform_4(%arg0: i32) -> (i32, i32) {
    %c0_i32 = arith.constant 0 : i32
    %c0_i32_0 = arith.constant 0 : i32
    %c0_i32_1 = arith.constant 0 : i32
    return %c0_i32, %c0_i32_0 : i32, i32
  }
  func.func @transform_5(%arg0: i32) -> (i32, i32) {
    %c0_i32 = arith.constant 0 : i32
    %c0_i32_0 = arith.constant 0 : i32
    %c0_i32_1 = arith.constant 0 : i32
    return %c0_i32, %c0_i32_0 : i32, i32
  }
  func.func @transform_6(%arg0: i32) -> (i32, i32) {
    %c0_i32 = arith.constant 0 : i32
    %c0_i32_0 = arith.constant 0 : i32
    return %arg0, %c0_i32 : i32, i32
  }
}

</mosaic_0001>

<bundles_post_ra>
// kernel: tpu_custom_call.1
= control target key start
LH: loop header
LB: loop body
LE: loop exit
PB: predicated region body
PF: predicated region fallthrough
CT: control target
= control target key end

     0   :  { %11 = vsyncpa [#allocation3], 0  ;;  %s4314_s0 = inlined_call_operand.vmem [shape: f32[256,32], index: 0, kind: input, shape index: {}]   ;;  %s4315_s1 = inlined_call_operand.vmem [shape: f32[32,32], index: 1, kind: input, shape index: {}]   ;;  %s4316_s2 = inlined_call_operand.vmem [shape: f32[32,32], index: 2, kind: input, shape index: {}]   ;;  %s4317_s3 = inlined_call_operand.vmem [shape: f32[32,128], index: 3, kind: input, shape index: {}]   ;;  %s4318_s4 = inlined_call_operand.vmem [shape: f32[2,32], index: 4, kind: input, shape index: {}]   ;;  %s4319_s5 = inlined_call_operand.vmem [shape: f32[1,128], index: 5, kind: input, shape index: {}]   ;;  %s4320_s6 = inlined_call_operand.hbm [shape: f32[256,128], index: 6, kind: output, shape index: {}]  }
   0x1   :  { %13 = vsyncpa [#allocation3 + $0x1], 0  ;;  %s2458_s21 = smov 0   ;;  %s2460_s22 = smov 0  }
   0x2   :  { %s2462_s23 = smov 0   ;;  %s2464_s24 = smov 0  }
   0x3 LB: > { %s2479_s25 = sadd.s32 4294967295, %s2418_s24   ;;  %s2138_s26 = sadd.s32 4294967294, %s2418_s24   ;;  %s2418_s24 = sphi %s2464_s24, %s4420_s24   ;;  %s2414_s23 = sphi %s2462_s23, %s4419_s23   ;;  %s2410_s22 = sphi %s2460_s22, %s4418_s22   ;;  %s2406_s21 = sphi %s2458_s21, %s4417_s21  }
   0x4   : > { %s2483_s27 = sadd.s32 1, %s2418_s24   ;;  %s157_s28 = sadd.s32 1, %s2414_s23 }
   0x5   : > { %s154_s29 = ssub.s32 %s2418_s24, %s2483_s27  ;;  %p167_p0 = scmp.ne.s32.totalorder %s2414_s23, %s2410_s22 }
   0x6   : > { %p155_p1 = scmp.eq.s32.totalorder %s154_s29, 0  ;;  %p168_p2 = scmp.eq.s32.totalorder %s2479_s25, 1 }
   0x7   : > { %p173_p3 = scmp.ne.s32.totalorder %s2410_s22, %s2406_s21  ;;  %p174_p4 = scmp.eq.s32.totalorder %s2138_s26, 1 }
   0x8   : > { %s2494_s30 = scalar_select %p155_p1, %s2414_s23, %s157_s28  }
   0x9   : > { %p2496_p5 = por %p168_p2, %p167_p0  ;;  %p2500_p6 = por %p174_p4, %p173_p3 }
   0xa   : > { %p2141_p7 = scmp.ge.s32.totalorder %s2418_s24, 1  ;;  %p216_p8 = scmp.lt.s32.totalorder %s2418_s24, 3 }
   0xc   : > { %p217_p9 = pnand %p2141_p7, %p216_p8 }
   0xd   : > { %s2143_s13 = sshll.u32 (!%p217_p9), %s2479_s25, 4  ;;  %s243_s16 = sand.u32 (!%p217_p9), 1, %s2410_s22  }
   0xe   : > { %220 = sbr.rel (%p217_p9) target bundleno = 725 (0x2d5), region = 44  ;;  %p247_p10 = scmp.lt.s32.totalorder (!%p217_p9), %s2143_s13, 31 }
   0xf   : > { %s2142_s17 = sshll.u32 (!%p217_p9), %s243_s16, 7  ;;  %s2061_s12 = scalar_lea.sflag (!%p217_p9), [#allocation3], %s243_s16 }
  0x10   : > { %s4262_s20 = scalar_lea.vmem (!%p217_p9), [#allocation2], %s2142_s17  ;;  %s2376_s17 = scalar_lea.hbm (!%p217_p9), %s4320_s6, 256 }
  0x11   : > { %s2073_s10 = sshll.u32 (!%p217_p9), %s4262_s20, 4  ;;  %s2074_s10 = int_to_ptr.vmem [resolvable:$true] %s2073_s10 }
  0x13   : > { %v272_v0 = vld [vmem:[%s4315_s1 + $0x18] sm:$0xff]  ;;  %v271_v1 = vld [vmem:[%s4315_s1 + $0x10] sm:$0xff]  ;;  %v270_v2 = vld [vmem:[%s4315_s1 + $0x8] sm:$0xff]  ;;  %s4422_s13 = smov (!%p247_p10, %s2143_s13), 31  ;;  %vm275_vm0 = vcmask 261120  }
  0x14   : > { %336 = vmatpush.msra.mxu0 %v272_v0  ;;  %2231 = vmatpush.msra.mxu3 %v272_v0  ;;  %v269_v3 = vld [vmem:[%s4315_s1] sm:$0xff]  ;;  %s2144_s18 = sshll.u32 %s4422_s13, 3  ;;  %v2420_v20 = vmov 1.4142135  }
  0x15   : > { %s2522_s26 = scalar_lea.vmem %s4314_s0, %s2144_s18  ;;  %2288 = vrcp.f32 %v2420_v20  ;;  %v2559_v26 = vld [vmem:[%s4318_s4] ss:$0 sm:$0xff] }
  0x16   : > { %337 = vmatpush.msra.mxu0 %v271_v1  ;;  %2232 = vmatpush.msra.mxu3 %v271_v1  ;;  %v253_v4 = vld [vmem:[%s2522_s26] sm:$0xff]  ;;  %v254_v6 = vld [vmem:[%s2522_s26 + $0x8] sm:$0xff]  ;;  %v255_v8 = vld [vmem:[%s2522_s26 + $0x10] sm:$0xff] }
  0x17   : > { %v265_v5 = vld [vmem:[%s2522_s26 + $0x60] sm:$0xff]  ;;  %v266_v7 = vld [vmem:[%s2522_s26 + $0x68] sm:$0xff]  ;;  %v267_v9 = vld [vmem:[%s2522_s26 + $0x70] sm:$0xff] }
  0x18   : > { %338 = vmatpush.msra.mxu0 %v270_v2  ;;  %2233 = vmatpush.msra.mxu3 %v270_v2  ;;  %v256_v10 = vld [vmem:[%s2522_s26 + $0x18] sm:$0xff]  ;;  %v257_v12 = vld [vmem:[%s2522_s26 + $0x20] sm:$0xff]  ;;  %v258_v13 = vld [vmem:[%s2522_s26 + $0x28] sm:$0xff] }
  0x19   : > { %v268_v11 = vld [vmem:[%s2522_s26 + $0x78] sm:$0xff]  ;;  %v259_v14 = vld [vmem:[%s2522_s26 + $0x30] sm:$0xff]  ;;  %v261_v16 = vld [vmem:[%s2522_s26 + $0x40] sm:$0xff] }
  0x1a   : > { %339 = vmatpush.msra.mxu0 %v269_v3  ;;  %2234 = vmatpush.msra.mxu3 %v269_v3  ;;  %v260_v15 = vld [vmem:[%s2522_s26 + $0x38] sm:$0xff]  ;;  %v262_v17 = vld [vmem:[%s2522_s26 + $0x48] sm:$0xff]  ;;  %v263_v18 = vld [vmem:[%s2522_s26 + $0x50] sm:$0xff] }
  0x1b   : > { %2145 = vmatmul.msk.f32.vlgmr.msra.gmra.mxu0 %vm275_vm0, %v253_v4  ;;  %2157 = vmatmul.msk.f32.vlgmr.msra.gmra.mxu3 %vm275_vm0, %v265_v5  ;;  %v264_v19 = vld [vmem:[%s2522_s26 + $0x58] sm:$0xff]  ;;  %v2289_v21 = vpop.eup %2288  ;;  %s2230_s26 = sshll.u32 %s2479_s25, 7 }
  0x1c   : > { %v406_v22 = vmul.f32 1.4142135, %v2289_v21  ;;  %vm410_vm1 = vweird.f32 %v2289_v21  ;;  %s2072_s9 = scalar_lea.hbm %s4320_s6, %s2230_s26 }
  0x1d   : > { %s2075_s11 = sshll.u32 %s2072_s9, 4  ;;  %s2076_s11 = int_to_ptr.hbm [resolvable:$true] %s2075_s11 }
  0x1e   : > { %v407_v23 = vsub.f32 1.0, %v406_v22  ;;  %s2370_s13 = sshra.s32 %s2076_s11, 4  ;;  %s2371_s13 = int_to_ptr.hbm [resolvable:$true] %s2370_s13 }
  0x1f   : > { %s2372_s25 = scalar_lea.hbm %s2371_s13, 128  ;;  %p2377_p0 = scmp.lt.s32.totalorder %s2371_s13, %s4320_s6 }
  0x20   : > { %v408_v24 = vmul.f32 %v2289_v21, %v407_v23  ;;  %p2373_p11 = scmp.ne.s32.totalorder %s2371_s13, %s2372_s25  ;;  %p2378_p1 = scmp.lt.s32.totalorder %s2376_s17, %s2372_s25 }
  0x22   : > { %v409_v25 = vadd.f32 %v2289_v21, %v408_v24  ;;  %p2374_p12 = pnand %p2373_p11, %p2496_p5  ;;  %p2379_p2 = por %p2378_p1, %p2377_p0 }
  0x23   : > { %2146 = vmatmul.msk.f32.gmra.mxu0 %vm275_vm0, %v254_v6  ;;  %2158 = vmatmul.msk.f32.gmra.mxu3 %vm275_vm0, %v266_v7 }
  0x24   : > { %v2561_v28 = vsel %vm410_vm1, %v2289_v21, %v409_v25  ;;  %p2375_p13 = pneg %p2374_p12 }
  0x26   : > { %p2380_p3 = pnand %p2379_p2, %p2375_p13 }
  0x2b   : > { %2147 = vmatmul.msk.f32.gmra.mxu0 %vm275_vm0, %v255_v8  ;;  %2159 = vmatmul.msk.f32.gmra.mxu3 %vm275_vm0, %v267_v9 }
  0x33   : > { %2148 = vmatmul.msk.f32.gmra.mxu0 %vm275_vm0, %v256_v10  ;;  %2160 = vmatmul.msk.f32.gmra.mxu3 %vm275_vm0, %v268_v11 }
  0x3b   : > { %2149 = vmatmul.msk.f32.gmra.mxu0 %vm275_vm0, %v257_v12 }
  0x43   : > { %2150 = vmatmul.msk.f32.gmra.mxu0 %vm275_vm0, %v258_v13 }
  0x4b   : > { %2151 = vmatmul.msk.f32.gmra.mxu0 %vm275_vm0, %v259_v14 }
  0x53   : > { %2152 = vmatmul.msk.f32.gmra.mxu0 %vm275_vm0, %v260_v15 }
  0x5b   : > { %2153 = vmatmul.msk.f32.gmra.mxu0 %vm275_vm0, %v261_v16 }
  0x63   : > { %2154 = vmatmul.msk.f32.gmra.mxu0 %vm275_vm0, %v262_v17 }
  0x6b   : > { %2155 = vmatmul.msk.f32.gmra.mxu0 %vm275_vm0, %v263_v18 }
  0x73   : > { %2156 = vmatmul.msk.f32.gmra.mxu0 %vm275_vm0, %v264_v19 }
  0x98   : > { %v341_v27 = vpop.f32.mrf.mxu0 }
  0x99   : > { %v2564_v29 = vadd.f32 %v2559_v26, %v341_v27 }
  0x9b   : > { %v2568_v30 = vmul.f32 %v2561_v28, %v2564_v29 }
  0x9d   : > { %v428_v31 = vmul.f32 %v2568_v30, %v2568_v30 }
  0x9e   : > { %v377_v32 = vpop.f32.mrf.mxu3 }
  0x9f   : > { %v2572_v33 = vmin.f32 %v428_v31, 16.0  ;;  %v2575_v34 = vadd.f32 %v2559_v26, %v377_v32 }
  0xa0   : > { %v344_v35 = vpop.f32.mrf.mxu0 }
  0xa1   : > { %v430_v36 = vmul.f32 2.1237322e-06, %v2572_v33  ;;  %v441_v37 = vmul.f32 3.8918573e-05, %v2572_v33  ;;  %v2581_v38 = vmul.f32 %v2561_v28, %v2575_v34  ;;  %v2584_v39 = vadd.f32 %v2559_v26, %v344_v35 }
  0xa3   : > { %v431_v40 = vadd.f32 0.00028619796, %v430_v36  ;;  %v442_v41 = vadd.f32 0.001143296, %v441_v37  ;;  %v908_v42 = vmul.f32 %v2581_v38, %v2581_v38  ;;  %v2590_v43 = vmul.f32 %v2561_v28, %v2584_v39 }
  0xa5   : > { %v432_v44 = vmul.f32 %v431_v40, %v2572_v33  ;;  %v443_v45 = vmul.f32 %v442_v41, %v2572_v33  ;;  %v2594_v46 = vmin.f32 %v908_v42, 16.0  ;;  %v468_v47 = vmul.f32 %v2590_v43, %v2590_v43 }
  0xa6   : > { %v380_v48 = vpop.f32.mrf.mxu3 }
  0xa7   : > { %v444_v49 = vadd.f32 0.014752088, %v443_v45  ;;  %v910_v50 = vmul.f32 2.1237322e-06, %v2594_v46  ;;  %v2600_v51 = vadd.f32 %v2559_v26, %v380_v48  ;;  %v433_v52 = vadd.f32 0.0036580483, %v432_v44 }
  0xa8   : > { %v921_v53 = vmul.f32 3.8918573e-05, %v2594_v46  ;;  %v2603_v54 = vmin.f32 %v468_v47, 16.0  ;;  %v347_v9 = vpop.f32.mrf.mxu0 }
  0xa9   : > { %v445_v55 = vmul.f32 %v444_v49, %v2572_v33  ;;  %v911_v56 = vadd.f32 0.00028619796, %v910_v50  ;;  %v2608_v57 = vmul.f32 %v2561_v28, %v2600_v51  ;;  %v434_v0 = vmul.f32 %v433_v52, %v2572_v33 }
  0xaa   : > { %v922_v58 = vadd.f32 0.001143296, %v921_v53  ;;  %v470_v59 = vmul.f32 2.1237322e-06, %v2603_v54  ;;  %v481_v60 = vmul.f32 3.8918573e-05, %v2603_v54  ;;  %v348_v19 = vadd.f32 %v2559_v26, %v347_v9 }
  0xab   : > { %v446_v61 = vadd.f32 0.112945676, %v445_v55  ;;  %v912_v62 = vmul.f32 %v911_v56, %v2594_v46  ;;  %v948_v63 = vmul.f32 %v2608_v57, %v2608_v57  ;;  %v435_v13 = vadd.f32 0.05243302, %v434_v0 }
  0xac   : > { %v923_v1 = vmul.f32 %v922_v58, %v2594_v46  ;;  %v471_v2 = vadd.f32 0.00028619796, %v470_v59  ;;  %v482_v3 = vadd.f32 0.001143296, %v481_v60  ;;  %v2636_v36 = vmul.f32 %v2561_v28, %v348_v19 }
  0xad   : > { %v447_v4 = vmul.f32 %v446_v61, %v2572_v33  ;;  %v2618_v5 = vmin.f32 %v948_v63, 16.0  ;;  %v913_v6 = vadd.f32 0.0036580483, %v912_v62  ;;  %v436_v27 = vmul.f32 %v435_v13, %v2572_v33 }
  0xae   : > { %v924_v7 = vadd.f32 0.014752088, %v923_v1  ;;  %v483_v8 = vmul.f32 %v482_v3, %v2603_v54  ;;  %v472_v11 = vmul.f32 %v471_v2, %v2603_v54  ;;  %v508_v52 = vmul.f32 %v2636_v36, %v2636_v36  ;;  %v383_v62 = vpop.f32.mrf.mxu3 }
  0xaf   : > { %v448_v10 = vadd.f32 0.4994258, %v447_v4  ;;  %v950_v12 = vmul.f32 2.1237322e-06, %v2618_v5  ;;  %v961_v16 = vmul.f32 3.8918573e-05, %v2618_v5  ;;  %v914_v20 = vmul.f32 %v913_v6, %v2594_v46 }
  0xb0   : > { %v925_v14 = vmul.f32 %v924_v7, %v2594_v46  ;;  %v484_v15 = vadd.f32 0.014752088, %v483_v8  ;;  %v473_v24 = vadd.f32 0.0036580483, %v472_v11  ;;  %v437_v45 = vadd.f32 0.18741608, %v436_v27 }
  0xb1   : > { %v449_v17 = vmul.f32 %v448_v10, %v2572_v33  ;;  %v951_v18 = vadd.f32 0.00028619796, %v950_v12  ;;  %v962_v25 = vadd.f32 0.001143296, %v961_v16  ;;  %v915_v37 = vadd.f32 0.05243302, %v914_v20 }
  0xb2   : > { %v926_v21 = vadd.f32 0.112945676, %v925_v14  ;;  %v485_v22 = vmul.f32 %v484_v15, %v2603_v54  ;;  %v474_v41 = vmul.f32 %v473_v24, %v2603_v54  ;;  %v2651_v61 = vmin.f32 %v508_v52, 16.0 }
  0xb3   : > { %v2629_v23 = vadd.f32 1.0, %v449_v17  ;;  %v952_v35 = vmul.f32 %v951_v18, %v2618_v5  ;;  %v963_v44 = vmul.f32 %v962_v25, %v2618_v5  ;;  %v916_v53 = vmul.f32 %v915_v37, %v2594_v46 }
  0xb4   : > { %v927_v31 = vmul.f32 %v926_v21, %v2594_v46  ;;  %v486_v32 = vadd.f32 0.112945676, %v485_v22  ;;  %v475_v58 = vadd.f32 0.05243302, %v474_v41  ;;  %v438_v63 = vmul.f32 %v437_v45, %v2572_v33 }
  0xb5   : > { %2290 = vrcp.f32 %v2629_v23  ;;  %v953_v49 = vadd.f32 0.0036580483, %v952_v35  ;;  %v964_v50 = vadd.f32 0.014752088, %v963_v44  ;;  %v2658_v1 = vmul.f32 0.5, %v2564_v29 }
  0xb6   : > { %v928_v40 = vadd.f32 0.4994258, %v927_v31  ;;  %v487_v42 = vmul.f32 %v486_v32, %v2603_v54  ;;  %v2661_v2 = vmul.f32 0.5, %v2584_v39  ;;  %v917_v4 = vadd.f32 0.18741608, %v916_v53 }
  0xb7   : > { %v965_v60 = vmul.f32 %v964_v50, %v2618_v5  ;;  %v954_v3 = vmul.f32 %v953_v49, %v2618_v5  ;;  %v2667_v8 = vadd.f32 %v2559_v26, %v383_v62  ;;  %v2670_v9 = vmul.f32 0.5, %v2575_v34  ;;  %v350_v50 = vpop.f32.mrf.mxu0 }
  0xb8   : > { %v929_v47 = vmul.f32 %v928_v40, %v2594_v46  ;;  %v488_v48 = vadd.f32 0.4994258, %v487_v42  ;;  %v476_v10 = vmul.f32 %v475_v58, %v2603_v54  ;;  %v510_v29 = vmul.f32 2.1237322e-06, %v2651_v61 }
  0xb9   : > { %v966_v7 = vadd.f32 0.112945676, %v965_v60  ;;  %v2674_v11 = vadd.f32 1.1283791, %v438_v63  ;;  %v2678_v39 = vmul.f32 0.5, %v2600_v51  ;;  %v2680_v12 = vmul.f32 0.5, %v348_v19 }
  0xba   : > { %v2645_v55 = vadd.f32 1.0, %v929_v47  ;;  %v489_v59 = vmul.f32 %v488_v48, %v2603_v54  ;;  %vm456_vm2 = vweird.f32 %v2629_v23  ;;  %v460_v13 = vand.u32 2147483647, %v2629_v23 }
  0xbb   : > { %v2647_v56 = vpop.eup %2290  ;;  %v955_v14 = vadd.f32 0.05243302, %v954_v3  ;;  %v967_v34 = vmul.f32 %v966_v7, %v2618_v5  ;;  %v511_v15 = vadd.f32 0.00028619796, %v510_v29  ;;  %v462_v17 = vand.u32 2147483648, %v2629_v23 }
  0xbc   : > { %v452_v0 = vmul.f32 %v2647_v56, %v2629_v23  ;;  %2292 = vrcp.f32 %v2645_v55  ;;  %v2664_v6 = vadd.f32 1.0, %v489_v59  ;;  %v918_v18 = vmul.f32 %v917_v4, %v2594_v46 }
  0xbd   : > { %v521_v20 = vmul.f32 3.8918573e-05, %v2651_v61  ;;  %v2690_v51 = vmul.f32 %v2561_v28, %v2667_v8  ;;  %vm936_vm3 = vweird.f32 %v2645_v55  ;;  %v477_v22 = vadd.f32 0.18741608, %v476_v10 }
  0xbe   : > { %v453_v33 = vsub.f32 1.0, %v452_v0  ;;  %2294 = vrcp.f32 %v2664_v6  ;;  %v942_v24 = vand.u32 2147483648, %v2645_v55  ;;  %v968_v25 = vadd.f32 0.4994258, %v967_v34 }
  0xbf   : > { %v512_v27 = vmul.f32 %v511_v15, %v2651_v61  ;;  %v522_v31 = vadd.f32 0.001143296, %v521_v20  ;;  %v940_v32 = vand.u32 2147483647, %v2645_v55  ;;  %v956_v35 = vmul.f32 %v955_v14, %v2618_v5 }
  0xc0   : > { %v454_v19 = vmul.f32 %v2647_v56, %v453_v33  ;;  %vm2701_vm5 = vcmp.eq.f32.partialorder %v460_v13, 8.507059e+37  ;;  %v919_v41 = vadd.f32 1.1283791, %v918_v18  ;;  %v969_v42 = vmul.f32 %v968_v25, %v2618_v5 }
  0xc1   : > { %v523_v44 = vmul.f32 %v522_v31, %v2651_v61  ;;  %v988_v45 = vmul.f32 %v2690_v51, %v2690_v51  ;;  %vm457_vm6 = vweird.f32 %v2647_v56  ;;  %v478_v49 = vmul.f32 %v477_v22, %v2603_v54 }
  0xc2   : > { %v2293_v16 = vpop.eup %2292  ;;  %v455_v47 = vadd.f32 %v2647_v56, %v454_v19  ;;  %v943_v53 = vor.u32 1.1754944e-38, %v942_v24  ;;  %v2718_v58 = vadd.f32 1.0, %v969_v42  ;;  %v513_v59 = vadd.f32 0.0036580483, %v512_v27  ;;  %vm2724_vm9 = vmor %vm456_vm2, %vm457_vm6 }
  0xc3   : > { %v932_v21 = vmul.f32 %v2293_v16, %v2645_v55  ;;  %vm937_vm4 = vweird.f32 %v2293_v16  ;;  %v524_v60 = vadd.f32 0.014752088, %v523_v44  ;;  %vm941_vm8 = vcmp.eq.f32.partialorder %v940_v32, 8.507059e+37  ;;  %v386_v32 = vpop.f32.mrf.mxu3 }
  0xc4   : > { %v2699_v37 = vpop.eup %2294  ;;  %vm2714_vm7 = vmor %vm936_vm3, %vm937_vm4  ;;  %v957_v0 = vadd.f32 0.18741608, %v956_v35  ;;  %v463_v55 = vor.u32 1.1754944e-38, %v462_v17  ;;  %v920_v3 = vmul.f32 %v919_v41, %v2581_v38  ;;  %v2729_v4 = vmin.f32 %v988_v45, 16.0 }
  0xc5   : > { %v933_v46 = vsub.f32 1.0, %v932_v21  ;;  %v492_v63 = vmul.f32 %v2699_v37, %v2664_v6  ;;  %v2732_v7 = vadd.f32 %v2559_v26, %v350_v50  ;;  %v459_v33 = vsel %vm2724_vm9, %v2647_v56, %v455_v47 }
  0xc6   : > { %v479_v23 = vadd.f32 1.1283791, %v478_v49  ;;  %v525_v29 = vmul.f32 %v524_v60, %v2651_v61  ;;  %2296 = vrcp.f32 %v2718_v58  ;;  %v514_v38 = vmul.f32 %v513_v59, %v2651_v61  ;;  %v1103_v60 = vld [vmem:[%s4316_s2 + $0x18] sm:$0xff] }
  0xc7   : > { %v934_v48 = vmul.f32 %v2293_v16, %v933_v46  ;;  %v990_v14 = vmul.f32 2.1237322e-06, %v2729_v4  ;;  %v493_v34 = vsub.f32 1.0, %v492_v63  ;;  %v502_v15 = vand.u32 2147483648, %v2664_v6  ;;  %1166 = vmatpush.msra.mxu1 %v1103_v60  ;;  %2235 = vmatpush.msrb.mxu3 %v1103_v60 }
  0xc8   : > { %v958_v17 = vmul.f32 %v957_v0, %v2618_v5  ;;  %v526_v18 = vadd.f32 0.112945676, %v525_v29  ;;  %v2748_v19 = vmul.f32 %v2561_v28, %v2732_v7  ;;  %v440_v21 = vmul.f32 %v2674_v11, %v2568_v30 }
  0xc9   : > { %v935_v62 = vadd.f32 %v2293_v16, %v934_v48  ;;  %v991_v20 = vadd.f32 0.00028619796, %v990_v14  ;;  %v464_v22 = vsel %vm2701_vm5, %v463_v55, %v459_v33  ;;  %v500_v24 = vand.u32 2147483647, %v2664_v6 }
  0xca   : > { %v527_v25 = vmul.f32 %v526_v18, %v2651_v61  ;;  %v515_v5 = vadd.f32 0.05243302, %v514_v38  ;;  %v548_v46 = vmul.f32 %v2748_v19, %v2748_v19  ;;  %v2760_v35 = vmul.f32 %v479_v23, %v2590_v43 }
  0xcb   : > { %v939_v10 = vsel %vm2714_vm7, %v2293_v16, %v935_v62  ;;  %v1001_v16 = vmul.f32 3.8918573e-05, %v2729_v4  ;;  %v992_v27 = vmul.f32 %v991_v20, %v2729_v4  ;;  %vm496_vm10 = vweird.f32 %v2664_v6 }
  0xcc   : > { %v944_v13 = vsel %vm941_vm8, %v943_v53, %v939_v10  ;;  %v503_v30 = vor.u32 1.1754944e-38, %v502_v15  ;;  %v959_v11 = vadd.f32 1.1283791, %v958_v17  ;;  %v2763_v40 = vpop.eup %2296  ;;  %v494_v42 = vmul.f32 %v2699_v37, %v493_v34  ;;  %v1102_v17 = vld [vmem:[%s4316_s2 + $0x10] sm:$0xff] }
  0xcd   : > { %v945_v56 = vmul.f32 %v944_v13, %v920_v3  ;;  %v1002_v31 = vadd.f32 0.001143296, %v1001_v16  ;;  %v528_v44 = vadd.f32 0.4994258, %v527_v25  ;;  %v2767_v47 = vmul.f32 %v464_v22, %v440_v21  ;;  %v353_v21 = vpop.f32.mrf.mxu0  ;;  %1167 = vmatpush.msra.mxu1 %v1102_v17  ;;  %2236 = vmatpush.msrb.mxu3 %v1102_v17 }
  0xce   : > { %v993_v48 = vadd.f32 0.0036580483, %v992_v27  ;;  %v2769_v49 = vmin.f32 %v548_v46, 16.0  ;;  %v2772_v43 = vadd.f32 %v2559_v26, %v386_v32  ;;  %vm497_vm11 = vweird.f32 %v2699_v37 }
  0xcf   : > { %v2173_v41 = vclamps-f32 %v945_v56, 1.0  ;;  %v1003_v45 = vmul.f32 %v1002_v31, %v2729_v4  ;;  %vm2775_vm12 = vcmp.eq.f32.partialorder %v500_v24, 8.507059e+37  ;;  %v516_v52 = vmul.f32 %v515_v5, %v2651_v61  ;;  %vm2811_vm13 = vmor %vm496_vm10, %vm497_vm11  ;;  %v1101_v5 = vld [vmem:[%s4316_s2 + $0x8] sm:$0xff] }
  0xd0   : > { %v529_v53 = vmul.f32 %v528_v44, %v2651_v61  ;;  %v972_v62 = vmul.f32 %v2763_v40, %v2718_v58  ;;  %v550_v63 = vmul.f32 2.1237322e-06, %v2769_v49  ;;  %v561_v0 = vmul.f32 3.8918573e-05, %v2769_v49  ;;  %1168 = vmatpush.msra.mxu1 %v1101_v5  ;;  %2237 = vmatpush.msrb.mxu3 %v1101_v5 }
  0xd1   : > { %v1004_v59 = vadd.f32 0.014752088, %v1003_v45  ;;  %v2790_v54 = vmul.f32 %v2561_v28, %v2772_v43  ;;  %v1080_v55 = vadd.f32 1.0, %v2173_v41  ;;  %v495_v3 = vadd.f32 %v2699_v37, %v494_v42 }
  0xd2   : > { %v2793_v33 = vadd.f32 1.0, %v529_v53  ;;  %v2797_v23 = vmul.f32 %v959_v11, %v2608_v57  ;;  %v994_v29 = vmul.f32 %v993_v48, %v2729_v4  ;;  %v551_v13 = vadd.f32 0.00028619796, %v550_v63  ;;  %v1100_v11 = vld [vmem:[%s4316_s2] sm:$0xff] }
  0xd3   : > { %v1005_v10 = vmul.f32 %v1004_v59, %v2729_v4  ;;  %v562_v38 = vadd.f32 0.001143296, %v561_v0  ;;  %v980_v14 = vand.u32 2147483647, %v2718_v58  ;;  %v517_v34 = vadd.f32 0.18741608, %v516_v52  ;;  %1169 = vmatpush.msra.mxu1 %v1100_v11  ;;  %2238 = vmatpush.msrb.mxu3 %v1100_v11 }
  0xd4   : > { %2298 = vrcp.f32 %v2793_v33  ;;  %v1028_v15 = vmul.f32 %v2790_v54, %v2790_v54  ;;  %v973_v18 = vsub.f32 1.0, %v972_v62  ;;  %v982_v56 = vand.u32 2147483648, %v2718_v58 }
  0xd5   : > { %v1006_v20 = vadd.f32 0.112945676, %v1005_v10  ;;  %v552_v16 = vmul.f32 %v551_v13, %v2769_v49  ;;  %v1096_v22 = vmul.f32 %v1080_v55, %v2670_v9  ;;  %v499_v24 = vsel %vm2811_vm13, %v2699_v37, %v495_v3  ;;  %v356_v11 = vpop.f32.mrf.mxu0 }
  0xd6   : > { %v2822_v6 = vmul.f32 0.5, %v2667_v8  ;;  %v563_v25 = vmul.f32 %v562_v38, %v2769_v49  ;;  %vm976_vm14 = vweird.f32 %v2718_v58  ;;  %v995_v27 = vadd.f32 0.05243302, %v994_v29 }
  0xd7   : > { %v1007_v31 = vmul.f32 %v1006_v20, %v2729_v4  ;;  %v553_v46 = vadd.f32 0.0036580483, %v552_v16  ;;  %v518_v9 = vmul.f32 %v517_v34, %v2651_v61  ;;  %v2831_v32 = vmin.f32 %v1028_v15, 16.0  ;;  %2189 = vmatmul.msk.f32.vlgmr.msrb.gmra.mxu3 %vm275_vm0, %v1096_v22 }
  0xd8   : > { %v564_v37 = vadd.f32 0.014752088, %v563_v25  ;;  %v2834_v8 = vadd.f32 %v2559_v26, %v353_v21  ;;  %v504_v41 = vsel %vm2775_vm12, %v503_v30, %v499_v24  ;;  %v974_v42 = vmul.f32 %v2763_v40, %v973_v18 }
  0xd9   : > { %vm2842_vm15 = vcmp.eq.f32.partialorder %v980_v14, 8.507059e+37  ;;  %v983_v61 = vor.u32 1.1754944e-38, %v982_v56  ;;  %v1008_v45 = vadd.f32 0.4994258, %v1007_v31  ;;  %v554_v52 = vmul.f32 %v553_v46, %v2769_v49 }
  0xda   : > { %v2846_v48 = vpop.eup %2298  ;;  %v565_v53 = vmul.f32 %v564_v37, %v2769_v49  ;;  %v1030_v59 = vmul.f32 2.1237322e-06, %v2831_v32  ;;  %v1041_v30 = vmul.f32 3.8918573e-05, %v2831_v32  ;;  %vm977_vm1 = vweird.f32 %v2763_v40 }
  0xdb   : > { %v532_v50 = vmul.f32 %v2846_v48, %v2793_v33  ;;  %v996_v60 = vmul.f32 %v995_v27, %v2729_v4  ;;  %v1009_v62 = vmul.f32 %v1008_v45, %v2729_v4  ;;  %v519_v63 = vadd.f32 1.1283791, %v518_v9  ;;  %vm2867_vm2 = vmor %vm976_vm14, %vm977_vm1 }
  0xdc   : > { %v566_v0 = vadd.f32 0.112945676, %v565_v53  ;;  %v1031_v55 = vadd.f32 0.00028619796, %v1030_v59  ;;  %v2860_v3 = vmul.f32 %v2561_v28, %v2834_v8  ;;  %v975_v10 = vadd.f32 %v2763_v40, %v974_v42 }
  0xdd   : > { %v533_v29 = vsub.f32 1.0, %v532_v50  ;;  %v2863_v13 = vadd.f32 1.0, %v1009_v62  ;;  %v1042_v38 = vadd.f32 0.001143296, %v1041_v30  ;;  %v555_v34 = vadd.f32 0.05243302, %v554_v52 }
  0xde   : > { %v567_v15 = vmul.f32 %v566_v0, %v2769_v49  ;;  %v1032_v17 = vmul.f32 %v1031_v55, %v2831_v32  ;;  %v588_v57 = vmul.f32 %v2860_v3, %v2860_v3  ;;  %v2876_v18 = vmul.f32 %v504_v41, %v2760_v35 }
  0xdf   : > { %v997_v56 = vadd.f32 0.18741608, %v996_v60  ;;  %2300 = vrcp.f32 %v2863_v13  ;;  %v2880_v58 = vmul.f32 0.5, %v2732_v7  ;;  %v2883_v20 = vmul.f32 %v519_v63, %v2636_v36 }
  0xe0   : > { %v540_v16 = vand.u32 2147483647, %v2793_v33  ;;  %v568_v21 = vadd.f32 0.4994258, %v567_v15  ;;  %v1043_v22 = vmul.f32 %v1042_v38, %v2831_v32  ;;  %v979_v24 = vsel %vm2867_vm2, %v2763_v40, %v975_v10 }
  0xe1   : > { %v534_v35 = vmul.f32 %v2846_v48, %v533_v29  ;;  %v1033_v25 = vadd.f32 0.0036580483, %v1032_v17  ;;  %v2891_v5 = vmin.f32 %v588_v57, 16.0  ;;  %v542_v7 = vand.u32 2147483648, %v2793_v33 }
  0xe2   : > { %v556_v27 = vmul.f32 %v555_v34, %v2769_v49  ;;  %v569_v36 = vmul.f32 %v568_v21, %v2769_v49  ;;  %v1044_v31 = vadd.f32 0.014752088, %v1043_v22  ;;  %v998_v46 = vmul.f32 %v997_v56, %v2729_v4 }
  0xe3   : > { %v1034_v9 = vmul.f32 %v1033_v25, %v2831_v32  ;;  %v590_v37 = vmul.f32 2.1237322e-06, %v2891_v5  ;;  %v601_v40 = vmul.f32 3.8918573e-05, %v2891_v5  ;;  %v984_v41 = vsel %vm2842_vm15, %v983_v61, %v979_v24 }
  0xe4   : > { %vm536_vm3 = vweird.f32 %v2793_v33  ;;  %v2903_v42 = vadd.f32 1.0, %v569_v36  ;;  %v1045_v45 = vmul.f32 %v1044_v31, %v2831_v32  ;;  %v535_v4 = vadd.f32 %v2846_v48, %v534_v35 }
  0xe5   : > { %v2906_v52 = vpop.eup %2300  ;;  %vm537_vm4 = vweird.f32 %v2846_v48  ;;  %v591_v53 = vadd.f32 0.00028619796, %v590_v37  ;;  %v602_v59 = vadd.f32 0.001143296, %v601_v40  ;;  %vm2910_vm5 = vcmp.eq.f32.partialorder %v540_v16, 8.507059e+37 }
  0xe6   : > { %v543_v44 = vor.u32 1.1754944e-38, %v542_v7  ;;  %v557_v61 = vadd.f32 0.18741608, %v556_v27  ;;  %2302 = vrcp.f32 %v2903_v42  ;;  %v2916_v50 = vmul.f32 %v984_v41, %v2797_v23  ;;  %vm2923_vm6 = vmor %vm536_vm3, %vm537_vm4  ;;  %v359_v27 = vpop.f32.mrf.mxu0 }
  0xe7   : > { %v999_v60 = vadd.f32 1.1283791, %v998_v46  ;;  %v1035_v62 = vadd.f32 0.05243302, %v1034_v9  ;;  %v2919_v63 = vadd.f32 %v2559_v26, %v356_v11  ;;  %v1012_v55 = vmul.f32 %v2906_v52, %v2863_v13 }
  0xe8   : > { %v1046_v10 = vadd.f32 0.112945676, %v1045_v45  ;;  %v592_v29 = vmul.f32 %v591_v53, %v2891_v5  ;;  %v603_v23 = vmul.f32 %v602_v59, %v2891_v5  ;;  %v539_v38 = vsel %vm2923_vm6, %v2846_v48, %v535_v4 }
  0xe9   : > { %v1022_v14 = vand.u32 2147483648, %v2863_v13  ;;  %v2936_v33 = vmul.f32 0.5, %v2772_v43  ;;  %v2939_v34 = vmul.f32 0.5, %v2834_v8  ;;  %v558_v15 = vmul.f32 %v557_v61, %v2769_v49 }
  0xea   : > { %v1047_v17 = vmul.f32 %v1046_v10, %v2831_v32  ;;  %v593_v57 = vadd.f32 0.0036580483, %v592_v29  ;;  %v604_v56 = vadd.f32 0.014752088, %v603_v23  ;;  %v2944_v16 = vmul.f32 %v999_v60, %v2690_v51 }
  0xeb   : > { %vm1016_vm7 = vweird.f32 %v2863_v13  ;;  %v1036_v48 = vmul.f32 %v1035_v62, %v2831_v32  ;;  %v2950_v43 = vmul.f32 %v2561_v28, %v2919_v63  ;;  %v544_v49 = vsel %vm2910_vm5, %v543_v44, %v539_v38 }
  0xec   : > { %v2952_v21 = vpop.eup %2302  ;;  %v1013_v8 = vsub.f32 1.0, %v1012_v55  ;;  %v1048_v22 = vadd.f32 0.4994258, %v1047_v17  ;;  %v605_v24 = vmul.f32 %v604_v56, %v2891_v5  ;;  %v1020_v51 = vand.u32 2147483647, %v2863_v13 }
  0xed   : > { %v2958_v35 = vor.u32 1.1754944e-38, %v1022_v14  ;;  %v572_v25 = vmul.f32 %v2952_v21, %v2903_v42  ;;  %v628_v7 = vmul.f32 %v2950_v43, %v2950_v43  ;;  %v559_v36 = vadd.f32 1.1283791, %v558_v15 }
  0xee   : > { %v1049_v31 = vmul.f32 %v1048_v22, %v2831_v32  ;;  %v594_v46 = vmul.f32 %v593_v57, %v2891_v5  ;;  %v606_v9 = vadd.f32 0.112945676, %v605_v24  ;;  %v2967_v37 = vmul.f32 %v544_v49, %v2883_v20 }
  0xef   : > { %vm1017_vm8 = vweird.f32 %v2906_v52  ;;  %v1037_v40 = vadd.f32 0.18741608, %v1036_v48  ;;  %v2970_v11 = vmin.f32 %v628_v7, 16.0  ;;  %v1014_v41 = vmul.f32 %v2906_v52, %v1013_v8 }
  0xf0   : > { %v2973_v45 = vadd.f32 1.0, %v1049_v31  ;;  %v607_v4 = vmul.f32 %v606_v9, %v2891_v5  ;;  %v2977_v53 = vadd.f32 %v2559_v26, %v359_v27  ;;  %vm2979_vm9 = vcmp.eq.f32.partialorder %v1020_v51, 8.507059e+37  ;;  %vm3003_vm11 = vmor %vm1016_vm7, %vm1017_vm8 }
  0xf1   : > { %v573_v20 = vsub.f32 1.0, %v572_v25  ;;  %v582_v30 = vand.u32 2147483648, %v2903_v42  ;;  %v630_v44 = vmul.f32 2.1237322e-06, %v2970_v11  ;;  %v641_v61 = vmul.f32 3.8918573e-05, %v2970_v11  ;;  %v362_v25 = vpop.f32.mrf.mxu0 }
  0xf2   : > { %v2987_v60 = vmul.f32 %v559_v36, %v2748_v19  ;;  %2304 = vrcp.f32 %v2973_v45  ;;  %v595_v62 = vadd.f32 0.05243302, %v594_v46  ;;  %v2161_v0 = vclamps-f32 %v2767_v47, 1.0 }
  0xf3   : > { %v580_v55 = vand.u32 2147483647, %v2903_v42  ;;  %v1038_v10 = vmul.f32 %v1037_v40, %v2831_v32  ;;  %v608_v29 = vadd.f32 0.4994258, %v607_v4  ;;  %v631_v23 = vadd.f32 0.00028619796, %v630_v44 }
  0xf4   : > { %v1015_v38 = vadd.f32 %v2906_v52, %v1014_v41  ;;  %vm576_vm10 = vweird.f32 %v2903_v42  ;;  %v642_v14 = vadd.f32 0.001143296, %v641_v61  ;;  %v2997_v19 = vmul.f32 %v2561_v28, %v2977_v53 }
  0xf5   : > { %v574_v32 = vmul.f32 %v2952_v21, %v573_v20  ;;  %v583_v15 = vor.u32 1.1754944e-38, %v582_v30  ;;  %v609_v17 = vmul.f32 %v608_v29, %v2891_v5  ;;  %v632_v57 = vmul.f32 %v631_v23, %v2970_v11 }
  0xf6   : > { %v596_v56 = vmul.f32 %v595_v62, %v2891_v5  ;;  %v643_v48 = vmul.f32 %v642_v14, %v2970_v11  ;;  %v668_v49 = vmul.f32 %v2997_v19, %v2997_v19  ;;  %v1068_v8 = vadd.f32 1.0, %v2161_v0 }
  0xf7   : > { %vm577_vm12 = vweird.f32 %v2952_v21  ;;  %vm3015_vm13 = vcmp.eq.f32.partialorder %v580_v55, 8.507059e+37  ;;  %v1039_v22 = vadd.f32 1.1283791, %v1038_v10  ;;  %v3019_v24 = vadd.f32 1.0, %v609_v17 }
  0xf8   : > { %v633_v51 = vadd.f32 0.0036580483, %v632_v57  ;;  %v3021_v7 = vpop.eup %2304  ;;  %v1019_v27 = vsel %vm3003_vm11, %v2906_v52, %v1015_v38  ;;  %v644_v36 = vadd.f32 0.014752088, %v643_v48  ;;  %v3026_v31 = vmin.f32 %v668_v49, 16.0  ;;  %vm3050_vm14 = vmor %vm576_vm10, %vm577_vm12 }
  0xf9   : > { %v1084_v46 = vmul.f32 %v1068_v8, %v2658_v1  ;;  %v575_v9 = vadd.f32 %v2952_v21, %v574_v32  ;;  %v1052_v40 = vmul.f32 %v3021_v7, %v2973_v45  ;;  %v1060_v41 = vand.u32 2147483647, %v2973_v45 }
  0xfa   : > { %2306 = vrcp.f32 %v3019_v24  ;;  %v1062_v4 = vand.u32 2147483648, %v2973_v45  ;;  %v597_v20 = vadd.f32 0.18741608, %v596_v56  ;;  %v634_v30 = vmul.f32 %v633_v51, %v2970_v11 }
  0xfb   : > { %2177 = vmatmul.msk.f32.vlgmr.msra.gmra.mxu1 %vm275_vm0, %v1084_v46  ;;  %v3038_v52 = vadd.f32 %v2559_v26, %v362_v25  ;;  %v1053_v1 = vsub.f32 1.0, %v1052_v40  ;;  %v645_v44 = vmul.f32 %v644_v36, %v2970_v11  ;;  %v670_v61 = vmul.f32 2.1237322e-06, %v3026_v31 }
  0xfc   : > { %v681_v62 = vmul.f32 3.8918573e-05, %v3026_v31  ;;  %v1024_v0 = vsel %vm2979_vm9, %v2958_v35, %v1019_v27  ;;  %v3055_v10 = vmul.f32 %v1039_v22, %v2790_v54  ;;  %v3058_v29 = vmul.f32 0.5, %v2919_v63 }
  0xfd   : > { %v635_v23 = vadd.f32 0.05243302, %v634_v30  ;;  %v579_v59 = vsel %vm3050_vm14, %v2952_v21, %v575_v9  ;;  %v646_v35 = vadd.f32 0.112945676, %v645_v44  ;;  %v671_v38 = vadd.f32 0.00028619796, %v670_v61 }
  0xfe   : > { %v682_v14 = vadd.f32 0.001143296, %v681_v62  ;;  %v1054_v42 = vmul.f32 %v3021_v7, %v1053_v1  ;;  %vm1056_vm15 = vweird.f32 %v2973_v45  ;;  %v598_v47 = vmul.f32 %v597_v20, %v2891_v5 }
  0xff   : > { %v3068_v54 = vmul.f32 %v2561_v28, %v3038_v52  ;;  %vm3072_vm1 = vcmp.eq.f32.partialorder %v1060_v41, 8.507059e+37  ;;  %v1063_v21 = vor.u32 1.1754944e-38, %v1062_v4  ;;  %v647_v17 = vmul.f32 %v646_v35, %v2970_v11  ;;  %v365_v4 = vpop.f32.mrf.mxu0 }
 0x100   : > { %v3070_v63 = vpop.eup %2306  ;;  %v672_v57 = vmul.f32 %v671_v38, %v3026_v31  ;;  %v683_v56 = vmul.f32 %v682_v14, %v3026_v31  ;;  %v584_v5 = vsel %vm3015_vm13, %v583_v15, %v579_v59  ;;  %v636_v49 = vmul.f32 %v635_v23, %v2970_v11 }
 0x101   : > { %v612_v48 = vmul.f32 %v3070_v63, %v3019_v24  ;;  %v708_v8 = vmul.f32 %v3068_v54, %v3068_v54  ;;  %vm1057_vm2 = vweird.f32 %v3021_v7  ;;  %v648_v22 = vadd.f32 0.4994258, %v647_v17 }
 0x102   : > { %v673_v51 = vadd.f32 0.0036580483, %v672_v57  ;;  %v684_v25 = vadd.f32 0.014752088, %v683_v56  ;;  %v1055_v27 = vadd.f32 %v3021_v7, %v1054_v42  ;;  %v599_v36 = vadd.f32 1.1283791, %v598_v47  ;;  %vm3099_vm3 = vmor %vm1056_vm15, %vm1057_vm2 }
 0x103   : > { %v3088_v46 = vmin.f32 %v708_v8, 16.0  ;;  %v2162_v15 = vclamps-f32 %v2876_v18, 1.0  ;;  %v613_v13 = vsub.f32 1.0, %v612_v48  ;;  %v649_v9 = vmul.f32 %v648_v22, %v2970_v11 }
 0x104   : > { %v674_v40 = vmul.f32 %v673_v51, %v3026_v31  ;;  %v685_v41 = vmul.f32 %v684_v25, %v3026_v31  ;;  %v3095_v20 = vmul.f32 %v1024_v0, %v2944_v16  ;;  %v637_v1 = vadd.f32 0.18741608, %v636_v49 }
 0x105   : > { %v710_v18 = vmul.f32 2.1237322e-06, %v3088_v46  ;;  %v721_v44 = vmul.f32 3.8918573e-05, %v3088_v46  ;;  %v3106_v61 = vmul.f32 %v584_v5, %v2987_v60  ;;  %v3108_v62 = vadd.f32 1.0, %v649_v9 }
 0x106   : > { %v675_v55 = vadd.f32 0.05243302, %v674_v40  ;;  %v686_v23 = vadd.f32 0.112945676, %v685_v41  ;;  %v3111_v16 = vmul.f32 %v599_v36, %v2860_v3  ;;  %v3114_v59 = vadd.f32 %v2559_v26, %v365_v4 }
 0x107   : > { %v711_v45 = vadd.f32 0.00028619796, %v710_v18  ;;  %v722_v0 = vadd.f32 0.001143296, %v721_v44  ;;  %v1059_v35 = vsel %vm3099_vm3, %v3021_v7, %v1055_v27  ;;  %v614_v38 = vmul.f32 %v3070_v63, %v613_v13  ;;  %v368_v30 = vpop.f32.mrf.mxu0 }
 0x108   : > { %2308 = vrcp.f32 %v3108_v62  ;;  %v1069_v60 = vadd.f32 1.0, %v2162_v15  ;;  %vm616_vm4 = vweird.f32 %v3019_v24  ;;  %v620_v14 = vand.u32 2147483647, %v3019_v24 }
 0x109   : > { %v687_v3 = vmul.f32 %v686_v23, %v3026_v31  ;;  %v712_v42 = vmul.f32 %v711_v45, %v3088_v46  ;;  %v622_v47 = vand.u32 2147483648, %v3019_v24  ;;  %v638_v17 = vmul.f32 %v637_v1, %v2970_v11 }
 0x10a   : > { %v676_v57 = vmul.f32 %v675_v55, %v3026_v31  ;;  %v723_v7 = vmul.f32 %v722_v0, %v3088_v46  ;;  %v1064_v56 = vsel %vm3072_vm1, %v1063_v21, %v1059_v35  ;;  %vm617_vm5 = vweird.f32 %v3070_v63 }
 0x10b   : > { %v688_v5 = vadd.f32 0.4994258, %v687_v3  ;;  %v713_v48 = vadd.f32 0.0036580483, %v712_v42  ;;  %v615_v49 = vadd.f32 %v3070_v63, %v614_v38  ;;  %v1085_v22 = vmul.f32 %v1069_v60, %v2661_v2  ;;  %vm3158_vm7 = vmor %vm616_vm4, %vm617_vm5 }
 0x10c   : > { %v724_v8 = vadd.f32 0.014752088, %v723_v7  ;;  %v3136_v51 = vmul.f32 %v2561_v28, %v3114_v59  ;;  %vm3138_vm6 = vcmp.eq.f32.partialorder %v620_v14, 8.507059e+37  ;;  %v2174_v25 = vclamps-f32 %v2916_v50, 1.0 }
 0x10d   : > { %v689_v32 = vmul.f32 %v688_v5, %v3026_v31  ;;  %v714_v21 = vmul.f32 %v713_v48, %v3088_v46  ;;  %v639_v36 = vadd.f32 1.1283791, %v638_v17  ;;  %v677_v15 = vadd.f32 0.18741608, %v676_v57  ;;  %2178 = vmatmul.msk.f32.gmra.mxu1 %vm275_vm0, %v1085_v22 }
 0x10e   : > { %v3145_v27 = vpop.eup %2308  ;;  %v725_v2 = vmul.f32 %v724_v8, %v3088_v46  ;;  %v748_v13 = vmul.f32 %v3136_v51, %v3136_v51  ;;  %v3152_v9 = vmul.f32 %v1064_v56, %v3055_v10  ;;  %v623_v40 = vor.u32 1.1754944e-38, %v622_v47 }
 0x10f   : > { %v652_v41 = vmul.f32 %v3145_v27, %v3108_v62  ;;  %v3164_v4 = vadd.f32 1.0, %v689_v32  ;;  %v619_v10 = vsel %vm3158_vm7, %v3070_v63, %v615_v49  ;;  %v1081_v44 = vadd.f32 1.0, %v2174_v25 }
 0x110   : > { %v726_v1 = vadd.f32 0.112945676, %v725_v2  ;;  %v3169_v18 = vmin.f32 %v748_v13, 16.0  ;;  %v715_v55 = vadd.f32 0.05243302, %v714_v21  ;;  %v2163_v23 = vclamps-f32 %v2967_v37, 1.0 }
 0x111   : > { %v653_v24 = vsub.f32 1.0, %v652_v41  ;;  %2310 = vrcp.f32 %v3164_v4  ;;  %v3174_v45 = vmul.f32 %v639_v36, %v2950_v43  ;;  %v678_v0 = vmul.f32 %v677_v15, %v3026_v31 }
 0x112   : > { %v727_v35 = vmul.f32 %v726_v1, %v3088_v46  ;;  %v3179_v38 = vadd.f32 %v2559_v26, %v368_v30  ;;  %v750_v60 = vmul.f32 2.1237322e-06, %v3169_v18  ;;  %v761_v14 = vmul.f32 3.8918573e-05, %v3169_v18 }
 0x113   : > { %v654_v63 = vmul.f32 %v3145_v27, %v653_v24  ;;  %v1097_v3 = vmul.f32 %v1081_v44, %v2678_v39  ;;  %v624_v37 = vsel %vm3138_vm6, %v623_v40, %v619_v10  ;;  %v660_v43 = vand.u32 2147483647, %v3108_v62 }
 0x114   : > { %v662_v31 = vand.u32 2147483648, %v3108_v62  ;;  %v728_v42 = vadd.f32 0.4994258, %v727_v35  ;;  %v716_v47 = vmul.f32 %v715_v55, %v3088_v46  ;;  %v751_v26 = vadd.f32 0.00028619796, %v750_v60 }
 0x115   : > { %v762_v17 = vadd.f32 0.001143296, %v761_v14  ;;  %2190 = vmatmul.msk.f32.gmra.mxu3 %vm275_vm0, %v1097_v3  ;;  %v1070_v57 = vadd.f32 1.0, %v2163_v23  ;;  %vm657_vm8 = vweird.f32 %v3145_v27  ;;  %v679_v7 = vadd.f32 1.1283791, %v678_v0 }
 0x116   : > { %v729_v39 = vmul.f32 %v728_v42, %v3088_v46  ;;  %v3195_v56 = vmul.f32 %v2561_v28, %v3179_v38  ;;  %v655_v48 = vadd.f32 %v3145_v27, %v654_v63  ;;  %v752_v49 = vmul.f32 %v751_v26, %v3169_v18 }
 0x117   : > { %v3197_v5 = vpop.eup %2310  ;;  %v763_v8 = vmul.f32 %v762_v17, %v3169_v18  ;;  %v1086_v22 = vmul.f32 %v1070_v57, %v2680_v12  ;;  %vm656_vm9 = vweird.f32 %v3108_v62  ;;  %vm3204_vm10 = vcmp.eq.f32.partialorder %v660_v43, 8.507059e+37 }
 0x118   : > { %v663_v32 = vor.u32 1.1754944e-38, %v662_v31  ;;  %v692_v21 = vmul.f32 %v3197_v5, %v3164_v4  ;;  %v3211_v25 = vmul.f32 %v624_v37, %v3111_v16  ;;  %v717_v36 = vadd.f32 0.18741608, %v716_v47  ;;  %vm3218_vm11 = vmor %vm656_vm9, %vm657_vm8 }
 0x119   : > { %v3213_v15 = vadd.f32 1.0, %v729_v39  ;;  %v764_v2 = vadd.f32 0.014752088, %v763_v8  ;;  %2179 = vmatmul.msk.f32.gmra.mxu1 %vm275_vm0, %v1086_v22  ;;  %v753_v13 = vadd.f32 0.0036580483, %v752_v49  ;;  %v788_v50 = vmul.f32 %v3195_v56, %v3195_v56 }
 0x11a   : > { %v693_v62 = vsub.f32 1.0, %v692_v21  ;;  %v2175_v16 = vclamps-f32 %v3095_v20, 1.0  ;;  %v659_v40 = vsel %vm3218_vm11, %v3145_v27, %v655_v48  ;;  %v3229_v41 = vmul.f32 %v679_v7, %v2997_v19  ;;  %v371_v20 = vpop.f32.mrf.mxu0 }
 0x11b   : > { %vm696_vm12 = vweird.f32 %v3164_v4  ;;  %2312 = vrcp.f32 %v3213_v15  ;;  %v700_v10 = vand.u32 2147483647, %v3164_v4  ;;  %v765_v1 = vmul.f32 %v764_v2, %v3169_v18 }
 0x11c   : > { %v694_v30 = vmul.f32 %v3197_v5, %v693_v62  ;;  %v3236_v44 = vmin.f32 %v788_v50, 16.0  ;;  %v702_v24 = vand.u32 2147483648, %v3164_v4  ;;  %v718_v27 = vmul.f32 %v717_v36, %v3088_v46  ;;  %v3250_v46 = vld [vmem:[%s4318_s4] ss:$0 sm:$0xff] }
 0x11d   : > { %v1082_v55 = vadd.f32 1.0, %v2175_v16  ;;  %v2164_v19 = vclamps-f32 %v3106_v61, 1.0  ;;  %v664_v23 = vsel %vm3204_vm10, %v663_v32, %v659_v40  ;;  %v754_v0 = vmul.f32 %v753_v13, %v3169_v18 }
 0x11e   : > { %v766_v35 = vadd.f32 0.112945676, %v765_v1  ;;  %v790_v63 = vmul.f32 2.1237322e-06, %v3236_v44  ;;  %v801_v60 = vmul.f32 3.8918573e-05, %v3236_v44  ;;  %v3253_v61 = vadd.f32 %v3250_v46, %v371_v20 }
 0x11f   : > { %v1098_v14 = vmul.f32 %v1082_v55, %v2822_v6  ;;  %v1071_v3 = vadd.f32 1.0, %v2164_v19  ;;  %v695_v37 = vadd.f32 %v3197_v5, %v694_v30  ;;  %vm697_vm13 = vweird.f32 %v3197_v5 }
 0x120   : > { %v767_v43 = vmul.f32 %v766_v35, %v3169_v18  ;;  %v791_v31 = vadd.f32 0.00028619796, %v790_v63  ;;  %vm3260_vm14 = vcmp.eq.f32.partialorder %v700_v10, 8.507059e+37  ;;  %v703_v47 = vor.u32 1.1754944e-38, %v702_v24  ;;  %vm3271_vm15 = vmor %vm696_vm12, %vm697_vm13 }
 0x121   : > { %v3258_v42 = vpop.eup %2312  ;;  %v802_v26 = vadd.f32 0.001143296, %v801_v60  ;;  %2191 = vmatmul.msk.f32.gmra.mxu3 %vm275_vm0, %v1098_v14  ;;  %v1087_v17 = vmul.f32 %v1071_v3, %v2880_v58  ;;  %v665_v57 = vmul.f32 %v664_v23, %v3174_v45  ;;  %v719_v7 = vadd.f32 1.1283791, %v718_v27 }
 0x122   : > { %v732_v39 = vmul.f32 %v3258_v42, %v3213_v15  ;;  %v755_v48 = vadd.f32 0.05243302, %v754_v0  ;;  %v768_v8 = vadd.f32 0.4994258, %v767_v43  ;;  %v792_v22 = vmul.f32 %v791_v31, %v3236_v44  ;;  %v374_v35 = vpop.f32.mrf.mxu0 }
 0x123   : > { %v803_v11 = vmul.f32 %v802_v26, %v3236_v44  ;;  %2180 = vmatmul.msk.f32.gmra.mxu1 %vm275_vm0, %v1087_v17  ;;  %v3280_v58 = vmul.f32 %v2561_v28, %v3253_v61  ;;  %v699_v45 = vsel %vm3271_vm15, %v3197_v5, %v695_v37  ;;  %v2176_v32 = vclamps-f32 %v3152_v9, 1.0 }
 0x124   : > { %v733_v4 = vsub.f32 1.0, %v732_v39  ;;  %v2165_v21 = vclamps-f32 %v3211_v25, 1.0  ;;  %v769_v36 = vmul.f32 %v768_v8, %v3169_v18  ;;  %v793_v2 = vadd.f32 0.0036580483, %v792_v22 }
 0x125   : > { %v804_v12 = vadd.f32 0.014752088, %v803_v11  ;;  %v828_v62 = vmul.f32 %v3280_v58, %v3280_v58  ;;  %v756_v50 = vmul.f32 %v755_v48, %v3169_v18  ;;  %v1083_v16 = vadd.f32 1.0, %v2176_v32 }
 0x126   : > { %v734_v13 = vmul.f32 %v3258_v42, %v733_v4  ;;  %v1072_v40 = vadd.f32 1.0, %v2165_v21  ;;  %v740_v5 = vand.u32 2147483647, %v3213_v15  ;;  %v3293_v30 = vadd.f32 1.0, %v769_v36 }
 0x127   : > { %v805_v9 = vmul.f32 %v804_v12, %v3236_v44  ;;  %v3296_v25 = vmin.f32 %v828_v62, 16.0  ;;  %v704_v10 = vsel %vm3260_vm14, %v703_v47, %v699_v45  ;;  %v794_v1 = vmul.f32 %v793_v2, %v3236_v44 }
 0x128   : > { %v1099_v20 = vmul.f32 %v1083_v16, %v2936_v33  ;;  %v1088_v24 = vmul.f32 %v1072_v40, %v2939_v34  ;;  %v735_v27 = vadd.f32 %v3258_v42, %v734_v13  ;;  %vm737_vm1 = vweird.f32 %v3258_v42 }
 0x129   : > { %v742_v55 = vand.u32 2147483648, %v3213_v15  ;;  %2314 = vrcp.f32 %v3293_v30  ;;  %v757_v19 = vadd.f32 0.18741608, %v756_v50  ;;  %v806_v23 = vadd.f32 0.112945676, %v805_v9 }
 0x12a   : > { %v830_v0 = vmul.f32 2.1237322e-06, %v3296_v25  ;;  %2192 = vmatmul.msk.f32.gmra.mxu3 %vm275_vm0, %v1099_v20  ;;  %v705_v63 = vmul.f32 %v704_v10, %v3229_v41  ;;  %v720_v33 = vmul.f32 %v719_v7, %v3068_v54  ;;  %vm736_vm2 = vweird.f32 %v3213_v15 }
 0x12b   : > { %v841_v34 = vmul.f32 3.8918573e-05, %v3296_v25  ;;  %2181 = vmatmul.msk.f32.gmra.mxu1 %vm275_vm0, %v1088_v24  ;;  %vm3314_vm3 = vmor %vm736_vm2, %vm737_vm1  ;;  %vm3318_vm4 = vcmp.eq.f32.partialorder %v740_v5, 8.507059e+37  ;;  %v795_v3 = vadd.f32 0.05243302, %v794_v1  ;;  %v807_v37 = vmul.f32 %v806_v23, %v3236_v44 }
 0x12c   : > { %v831_v41 = vadd.f32 0.00028619796, %v830_v0  ;;  %v739_v54 = vsel %vm3314_vm3, %v3258_v42, %v735_v27  ;;  %v3327_v43 = vadd.f32 %v3250_v46, %v374_v35  ;;  %v2166_v31 = vclamps-f32 %v665_v57, 1.0 }
 0x12d   : > { %v842_v15 = vadd.f32 0.001143296, %v841_v34  ;;  %v743_v6 = vor.u32 1.1754944e-38, %v742_v55  ;;  %v758_v47 = vmul.f32 %v757_v19, %v3169_v18  ;;  %v808_v26 = vadd.f32 0.4994258, %v807_v37 }
 0x12e   : > { %v832_v17 = vmul.f32 %v831_v41, %v3296_v25  ;;  %v3334_v48 = vmul.f32 %v2561_v28, %v3327_v43  ;;  %v1073_v49 = vadd.f32 1.0, %v2166_v31  ;;  %v2167_v42 = vclamps-f32 %v705_v63, 1.0 }
 0x12f   : > { %v2315_v7 = vpop.eup %2314  ;;  %v843_v39 = vmul.f32 %v842_v15, %v3296_v25  ;;  %v744_v46 = vsel %vm3318_vm4, %v743_v6, %v739_v54  ;;  %v796_v8 = vmul.f32 %v795_v3, %v3236_v44  ;;  %v809_v18 = vmul.f32 %v808_v26, %v3236_v44 }
 0x130   : > { %v772_v57 = vmul.f32 %v2315_v7, %v3293_v30  ;;  %v833_v22 = vadd.f32 0.0036580483, %v832_v17  ;;  %v868_v45 = vmul.f32 %v3334_v48, %v3334_v48  ;;  %v1089_v4 = vmul.f32 %v1073_v49, %v3058_v29 }
 0x131   : > { %v844_v11 = vadd.f32 0.014752088, %v843_v39  ;;  %v780_v21 = vand.u32 2147483647, %v3293_v30  ;;  %v782_v36 = vand.u32 2147483648, %v3293_v30  ;;  %v3346_v2 = vadd.f32 1.0, %v809_v18 }
 0x132   : > { %v773_v32 = vsub.f32 1.0, %v772_v57  ;;  %v745_v12 = vmul.f32 %v744_v46, %v720_v33  ;;  %v3349_v13 = vmin.f32 %v868_v45, 16.0  ;;  %v1074_v50 = vadd.f32 1.0, %v2167_v42 }
 0x133   : > { %v845_v62 = vmul.f32 %v844_v11, %v3296_v25  ;;  %2182 = vmatmul.msk.f32.gmra.mxu1 %vm275_vm0, %v1089_v4  ;;  %v395_v16 = vmul.f32 0.5, %v2977_v53  ;;  %vm777_vm5 = vweird.f32 %v2315_v7  ;;  %2316 = vrcp.f32 %v3346_v2 }
 0x134   : > { %v774_v40 = vmul.f32 %v2315_v7, %v773_v32  ;;  %v759_v29 = vadd.f32 1.1283791, %v758_v47  ;;  %vm776_vm6 = vweird.f32 %v3293_v30  ;;  %v797_v5 = vadd.f32 0.18741608, %v796_v8 }
 0x135   : > { %v834_v9 = vmul.f32 %v833_v22, %v3296_v25  ;;  %v846_v1 = vadd.f32 0.112945676, %v845_v62  ;;  %v870_v20 = vmul.f32 2.1237322e-06, %v3349_v13  ;;  %v881_v24 = vmul.f32 3.8918573e-05, %v3349_v13  ;;  %vm778_vm7 = vmor %vm776_vm6, %vm777_vm5 }
 0x136   : > { %v775_v10 = vadd.f32 %v2315_v7, %v774_v40  ;;  %vm781_vm8 = vcmp.eq.f32.partialorder %v780_v21, 8.507059e+37  ;;  %v783_v27 = vor.u32 1.1754944e-38, %v782_v36  ;;  %v1090_v53 = vmul.f32 %v1074_v50, %v395_v16 }
 0x137   : > { %v2168_v55 = vclamps-f32 %v745_v12, 1.0  ;;  %v847_v23 = vmul.f32 %v846_v1, %v3296_v25  ;;  %v871_v0 = vadd.f32 0.00028619796, %v870_v20  ;;  %v882_v35 = vadd.f32 0.001143296, %v881_v24 }
 0x138   : > { %v779_v19 = vsel %vm778_vm7, %v2315_v7, %v775_v10  ;;  %v760_v30 = vmul.f32 %v759_v29, %v3136_v51  ;;  %v798_v33 = vmul.f32 %v797_v5, %v3236_v44  ;;  %v835_v60 = vadd.f32 0.05243302, %v834_v9 }
 0x139   : > { %v784_v63 = vsel %vm781_vm8, %v783_v27, %v779_v19  ;;  %v2317_v34 = vpop.eup %2316  ;;  %v848_v14 = vadd.f32 0.4994258, %v847_v23  ;;  %v872_v3 = vmul.f32 %v871_v0, %v3349_v13  ;;  %v883_v37 = vmul.f32 %v882_v35, %v3349_v13 }
 0x13a   : > { %v785_v41 = vmul.f32 %v784_v63, %v760_v30  ;;  %v812_v54 = vmul.f32 %v2317_v34, %v3346_v2  ;;  %v1075_v15 = vadd.f32 1.0, %v2168_v55  ;;  %v396_v31 = vmul.f32 0.5, %v3038_v52 }
 0x13b   : > { %2183 = vmatmul.msk.f32.gmra.mxu1 %vm275_vm0, %v1090_v53  ;;  %v849_v51 = vmul.f32 %v848_v14, %v3296_v25  ;;  %v884_v6 = vadd.f32 0.014752088, %v883_v37  ;;  %v799_v47 = vadd.f32 1.1283791, %v798_v33  ;;  %v820_v26 = vand.u32 2147483647, %v3346_v2 }
 0x13c   : > { %v813_v44 = vsub.f32 1.0, %v812_v54  ;;  %v822_v17 = vand.u32 2147483648, %v3346_v2  ;;  %v836_v7 = vmul.f32 %v835_v60, %v3296_v25  ;;  %v873_v49 = vadd.f32 0.0036580483, %v872_v3 }
 0x13d   : > { %v850_v39 = vadd.f32 1.0, %v849_v51  ;;  %v885_v42 = vmul.f32 %v884_v6, %v3349_v13  ;;  %vm817_vm9 = vweird.f32 %v2317_v34  ;;  %v1091_v57 = vmul.f32 %v1075_v15, %v396_v31 }
 0x13e   : > { %v814_v46 = vmul.f32 %v2317_v34, %v813_v44  ;;  %v2169_v8 = vclamps-f32 %v785_v41, 1.0  ;;  %vm816_vm10 = vweird.f32 %v3346_v2  ;;  %v800_v22 = vmul.f32 %v799_v47, %v3195_v56 }
 0x13f   : > { %2318 = vrcp.f32 %v850_v39  ;;  %v886_v18 = vadd.f32 0.112945676, %v885_v42  ;;  %vm818_vm11 = vmor %vm816_vm10, %vm817_vm9  ;;  %v823_v11 = vor.u32 1.1754944e-38, %v822_v17  ;;  %v837_v45 = vadd.f32 0.18741608, %v836_v7 }
 0x140   : > { %v815_v52 = vadd.f32 %v2317_v34, %v814_v46  ;;  %v874_v4 = vmul.f32 %v873_v49, %v3349_v13  ;;  %vm821_vm12 = vcmp.eq.f32.partialorder %v820_v26, 8.507059e+37  ;;  %v1076_v36 = vadd.f32 1.0, %v2169_v8 }
 0x141   : > { %v887_v21 = vmul.f32 %v886_v18, %v3349_v13  ;;  %v397_v62 = vmul.f32 0.5, %v3114_v59  ;;  %v838_v56 = vmul.f32 %v837_v45, %v3296_v25  ;;  %v860_v27 = vand.u32 2147483647, %v850_v39 }
 0x142   : > { %v819_v32 = vsel %vm818_vm11, %v2317_v34, %v815_v52  ;;  %v875_v40 = vadd.f32 0.05243302, %v874_v4  ;;  %v862_v53 = vand.u32 2147483648, %v850_v39  ;;  %v398_v25 = vmul.f32 0.5, %v3179_v38 }
 0x143   : > { %2184 = vmatmul.msk.f32.gmra.mxu1 %vm275_vm0, %v1091_v57  ;;  %v824_v12 = vsel %vm821_vm12, %v823_v11, %v819_v32  ;;  %v888_v2 = vadd.f32 0.4994258, %v887_v21  ;;  %v1092_v9 = vmul.f32 %v1076_v36, %v397_v62  ;;  %v839_v24 = vadd.f32 1.1283791, %v838_v56  ;;  %v3393_v57 = vld [vmem:[%s4318_s4 + $0x1] ss:$0 sm:$0xff] }
 0x144   : > { %v825_v50 = vmul.f32 %v824_v12, %v800_v22  ;;  %v876_v55 = vmul.f32 %v875_v40, %v3349_v13  ;;  %vm856_vm14 = vweird.f32 %v850_v39  ;;  %v863_v0 = vor.u32 1.1754944e-38, %v862_v53 }
 0x145   : > { %v2319_v16 = vpop.eup %2318  ;;  %v889_v5 = vmul.f32 %v888_v2, %v3349_v13  ;;  %v840_v30 = vmul.f32 %v839_v24, %v3280_v58  ;;  %vm861_vm1 = vcmp.eq.f32.partialorder %v860_v27, 8.507059e+37  ;;  %v399_v54 = vmul.f32 0.5, %v3253_v61 }
 0x146   : > { %v852_v29 = vmul.f32 %v2319_v16, %v850_v39  ;;  %v2170_v10 = vclamps-f32 %v825_v50, 1.0  ;;  %vm857_vm13 = vweird.f32 %v2319_v16  ;;  %v877_v35 = vadd.f32 0.18741608, %v876_v55 }
 0x147   : > { %v890_v20 = vadd.f32 1.0, %v889_v5  ;;  %vm858_vm15 = vmor %vm856_vm14, %vm857_vm13  ;;  %v400_v49 = vmul.f32 0.5, %v3327_v43 }
 0x148   : > { %v853_v1 = vsub.f32 1.0, %v852_v29  ;;  %v1077_v59 = vadd.f32 1.0, %v2170_v10  ;;  %v878_v3 = vmul.f32 %v877_v35, %v3349_v13 }
 0x149   : > { %2320 = vrcp.f32 %v890_v20  ;;  %v902_v15 = vand.u32 2147483648, %v890_v20  ;;  %v900_v58 = vand.u32 2147483647, %v890_v20  ;;  %vm896_vm3 = vweird.f32 %v890_v20 }
 0x14a   : > { %v854_v19 = vmul.f32 %v2319_v16, %v853_v1  ;;  %v1093_v33 = vmul.f32 %v1077_v59, %v398_v25  ;;  %v879_v51 = vadd.f32 1.1283791, %v878_v3 }
 0x14b   : > { %2185 = vmatmul.msk.f32.gmra.mxu1 %vm275_vm0, %v1092_v9  ;;  %v903_v26 = vor.u32 1.1754944e-38, %v902_v15  ;;  %vm901_vm5 = vcmp.eq.f32.partialorder %v900_v58, 8.507059e+37 }
 0x14c   : > { %v855_v23 = vadd.f32 %v2319_v16, %v854_v19  ;;  %v880_v13 = vmul.f32 %v879_v51, %v3334_v48 }
 0x14e   : > { %v859_v63 = vsel %vm858_vm15, %v2319_v16, %v855_v23 }
 0x14f   : > { %v864_v34 = vsel %vm861_vm1, %v863_v0, %v859_v63  ;;  %v2321_v60 = vpop.eup %2320 }
 0x150   : > { %v865_v14 = vmul.f32 %v864_v34, %v840_v30  ;;  %v892_v37 = vmul.f32 %v2321_v60, %v890_v20  ;;  %vm897_vm2 = vweird.f32 %v2321_v60 }
 0x151   : > { %vm898_vm4 = vmor %vm896_vm3, %vm897_vm2 }
 0x152   : > { %v2171_v41 = vclamps-f32 %v865_v14, 1.0  ;;  %v893_v38 = vsub.f32 1.0, %v892_v37 }
 0x153   : > { %2186 = vmatmul.msk.f32.gmra.mxu1 %vm275_vm0, %v1093_v33 }
 0x154   : > { %v1078_v31 = vadd.f32 1.0, %v2171_v41  ;;  %v894_v6 = vmul.f32 %v2321_v60, %v893_v38 }
 0x156   : > { %v1094_v47 = vmul.f32 %v1078_v31, %v399_v54  ;;  %v895_v44 = vadd.f32 %v2321_v60, %v894_v6 }
 0x158   : > { %v899_v17 = vsel %vm898_vm4, %v2321_v60, %v895_v44 }
 0x159   : > { %v904_v7 = vsel %vm901_vm5, %v903_v26, %v899_v17 }
 0x15a   : > { %v905_v39 = vmul.f32 %v904_v7, %v880_v13  ;;  %v1207_v8 = vpop.f32.mrf.mxu3 }
 0x15b   : > { %2187 = vmatmul.msk.f32.gmra.mxu1 %vm275_vm0, %v1094_v47  ;;  %v3396_v48 = vadd.f32 %v3393_v57, %v1207_v8 }
 0x15c   : > { %v2172_v61 = vclamps-f32 %v905_v39, 1.0 }
 0x15d   : > { %v3403_v43 = vmul.f32 %v3396_v48, %v2561_v28 }
 0x15e   : > { %v1079_v42 = vadd.f32 1.0, %v2172_v61 }
 0x15f   : > { %v1731_v11 = vmul.f32 %v3403_v43, %v3403_v43 }
 0x160   : > { %v1095_v46 = vmul.f32 %v1079_v42, %v400_v49 }
 0x161   : > { %v3413_v4 = vmin.f32 %v1731_v11, 16.0 }
 0x163   : > { %2188 = vmatmul.msk.f32.gmra.mxu1 %vm275_vm0, %v1095_v46  ;;  %v1744_v21 = vmul.f32 3.8918573e-05, %v3413_v4  ;;  %v1733_v12 = vmul.f32 2.1237322e-06, %v3413_v4 }
 0x165   : > { %v1745_v62 = vadd.f32 0.001143296, %v1744_v21  ;;  %v1734_v56 = vadd.f32 0.00028619796, %v1733_v12 }
 0x167   : > { %v1746_v2 = vmul.f32 %v1745_v62, %v3413_v4  ;;  %v1735_v1 = vmul.f32 %v1734_v56, %v3413_v4 }
 0x169   : > { %v1747_v40 = vadd.f32 0.014752088, %v1746_v2  ;;  %v1736_v25 = vadd.f32 0.0036580483, %v1735_v1 }
 0x16b   : > { %v1748_v5 = vmul.f32 %v1747_v40, %v3413_v4  ;;  %v1737_v34 = vmul.f32 %v1736_v25, %v3413_v4 }
 0x16d   : > { %v1749_v20 = vadd.f32 0.112945676, %v1748_v5  ;;  %v1738_v54 = vadd.f32 0.05243302, %v1737_v34 }
 0x16f   : > { %v1750_v55 = vmul.f32 %v1749_v20, %v3413_v4  ;;  %v1739_v49 = vmul.f32 %v1738_v54, %v3413_v4 }
 0x171   : > { %v1751_v0 = vadd.f32 0.4994258, %v1750_v55  ;;  %v1740_v12 = vadd.f32 0.18741608, %v1739_v49 }
 0x173   : > { %v1752_v63 = vmul.f32 %v1751_v0, %v3413_v4  ;;  %v1741_v20 = vmul.f32 %v1740_v12, %v3413_v4 }
 0x175   : > { %v3443_v3 = vadd.f32 1.0, %v1752_v63 }
 0x177   : > { %2322 = vrcp.f32 %v3443_v3  ;;  %vm1759_vm7 = vweird.f32 %v3443_v3 }
 0x178   : > { %v1171_v52 = vpop.f32.mrf.mxu1 }
 0x179   : > { %v3399_v18 = vadd.f32 %v3393_v57, %v1171_v52 }
 0x17b   : > { %v3407_v22 = vmul.f32 %v3399_v18, %v2561_v28 }
 0x17d   : > { %v1251_v45 = vmul.f32 %v3407_v22, %v3407_v22  ;;  %v3463_v39 = vpop.eup %2322 }
 0x17e   : > { %v1755_v52 = vmul.f32 %v3463_v39, %v3443_v3  ;;  %vm1760_vm6 = vweird.f32 %v3463_v39 }
 0x17f   : > { %v3415_v32 = vmin.f32 %v1251_v45, 16.0  ;;  %vm3525_vm8 = vmor %vm1759_vm7, %vm1760_vm6 }
 0x181   : > { %v1264_v36 = vmul.f32 3.8918573e-05, %v3415_v32  ;;  %v1253_v9 = vmul.f32 2.1237322e-06, %v3415_v32 }
 0x183   : > { %v1265_v50 = vadd.f32 0.001143296, %v1264_v36  ;;  %v1254_v19 = vadd.f32 0.00028619796, %v1253_v9 }
 0x185   : > { %v1266_v16 = vmul.f32 %v1265_v50, %v3415_v32  ;;  %v1255_v33 = vmul.f32 %v1254_v19, %v3415_v32 }
 0x187   : > { %v1267_v29 = vadd.f32 0.014752088, %v1266_v16  ;;  %v1256_v38 = vadd.f32 0.0036580483, %v1255_v33 }
 0x189   : > { %v1268_v10 = vmul.f32 %v1267_v29, %v3415_v32  ;;  %v1257_v13 = vmul.f32 %v1256_v38, %v3415_v32  ;;  %v1756_v29 = vsub.f32 1.0, %v1755_v52 }
 0x18a   : > { %v1174_v27 = vpop.f32.mrf.mxu1 }
 0x18b   : > { %v1269_v24 = vadd.f32 0.112945676, %v1268_v10  ;;  %v3427_v53 = vadd.f32 %v3393_v57, %v1174_v27  ;;  %v1258_v11 = vadd.f32 0.05243302, %v1257_v13  ;;  %v1757_v25 = vmul.f32 %v3463_v39, %v1756_v29 }
 0x18c   : > { %v1765_v13 = vand.u32 2147483648, %v3443_v3 }
 0x18d   : > { %v1270_v59 = vmul.f32 %v1269_v24, %v3415_v32  ;;  %v3433_v23 = vmul.f32 %v3427_v53, %v2561_v28  ;;  %v1259_v5 = vmul.f32 %v1258_v11, %v3415_v32  ;;  %v3501_v34 = vmul.f32 0.5, %v3427_v53 }
 0x18f   : > { %v1271_v35 = vadd.f32 0.4994258, %v1270_v59  ;;  %v1291_v30 = vmul.f32 %v3433_v23, %v3433_v23  ;;  %v3494_v59 = vmul.f32 0.5, %v3399_v18  ;;  %v1260_v0 = vadd.f32 0.18741608, %v1259_v5 }
 0x191   : > { %v1272_v60 = vmul.f32 %v1271_v35, %v3415_v32  ;;  %v3441_v14 = vmin.f32 %v1291_v30, 16.0 }
 0x193   : > { %v1293_v37 = vmul.f32 2.1237322e-06, %v3441_v14  ;;  %v1304_v41 = vmul.f32 3.8918573e-05, %v3441_v14  ;;  %v3448_v15 = vadd.f32 1.0, %v1272_v60  ;;  %v3504_v60 = vmul.f32 0.5, %v3396_v48 }
 0x194   : > { %v1261_v48 = vmul.f32 %v1260_v0, %v3415_v32 }
 0x195   : > { %v1294_v31 = vadd.f32 0.00028619796, %v1293_v37  ;;  %v1305_v51 = vadd.f32 0.001143296, %v1304_v41  ;;  %2324 = vrcp.f32 %v3448_v15  ;;  %v1283_v33 = vand.u32 2147483647, %v3448_v15 }
 0x196   : > { %v1177_v6 = vpop.f32.mrf.mxu1  ;;  %v1742_v37 = vadd.f32 1.1283791, %v1741_v20  ;;  %vm1279_vm11 = vweird.f32 %v3448_v15 }
 0x197   : > { %v3451_v58 = vadd.f32 %v3393_v57, %v1177_v6  ;;  %v1295_v47 = vmul.f32 %v1294_v31, %v3441_v14  ;;  %v1306_v44 = vmul.f32 %v1305_v51, %v3441_v14  ;;  %v1758_v31 = vadd.f32 %v3463_v39, %v1757_v25 }
 0x198   : > { %v1210_v26 = vpop.f32.mrf.mxu3  ;;  %vm3571_vm13 = vcmp.eq.f32.partialorder %v1283_v33, 8.507059e+37 }
 0x199   : > { %v3458_v17 = vmul.f32 %v3451_v58, %v2561_v28  ;;  %v3461_v7 = vadd.f32 %v3393_v57, %v1210_v26  ;;  %v1307_v61 = vadd.f32 0.014752088, %v1306_v44  ;;  %v1296_v42 = vadd.f32 0.0036580483, %v1295_v47 }
 0x19a   : > { %v1763_v26 = vand.u32 2147483647, %v3443_v3  ;;  %v1762_v11 = vsel %vm3525_vm8, %v3463_v39, %v1758_v31  ;;  %v3595_v32 = vmul.f32 0.5, %v3451_v58 }
 0x19b   : > { %v1331_v46 = vmul.f32 %v3458_v17, %v3458_v17  ;;  %v1308_v8 = vmul.f32 %v1307_v61, %v3441_v14  ;;  %v3476_v21 = vmul.f32 %v3461_v7, %v2561_v28  ;;  %v1297_v62 = vmul.f32 %v1296_v42, %v3441_v14  ;;  %v3483_v56 = vpop.eup %2324 }
 0x19c   : > { %v1275_v24 = vmul.f32 %v3483_v56, %v3448_v15  ;;  %vm1764_vm9 = vcmp.eq.f32.partialorder %v1763_v26, 8.507059e+37  ;;  %vm1280_vm10 = vweird.f32 %v3483_v56 }
 0x19d   : > { %v3472_v45 = vmin.f32 %v1331_v46, 16.0  ;;  %v1309_v36 = vadd.f32 0.112945676, %v1308_v8  ;;  %v1771_v16 = vmul.f32 %v3476_v21, %v3476_v21  ;;  %v1298_v27 = vadd.f32 0.05243302, %v1297_v62  ;;  %vm3567_vm12 = vmor %vm1279_vm11, %vm1280_vm10 }
 0x19e   : > { %v1276_v18 = vsub.f32 1.0, %v1275_v24  ;;  %v1285_v46 = vand.u32 2147483648, %v3448_v15 }
 0x19f   : > { %v1333_v50 = vmul.f32 2.1237322e-06, %v3472_v45  ;;  %v1344_v2 = vmul.f32 3.8918573e-05, %v3472_v45  ;;  %v1310_v40 = vmul.f32 %v1309_v36, %v3441_v14  ;;  %v3491_v19 = vmin.f32 %v1771_v16, 16.0 }
 0x1a0   : > { %v1180_v4 = vpop.f32.mrf.mxu1  ;;  %v1299_v41 = vmul.f32 %v1298_v27, %v3441_v14  ;;  %v1277_v42 = vmul.f32 %v3483_v56, %v1276_v18  ;;  %v1766_v16 = vor.u32 1.1754944e-38, %v1765_v13  ;;  %v1743_v27 = vmul.f32 %v1742_v37, %v3403_v43 }
 0x1a1   : > { %v1334_v9 = vadd.f32 0.00028619796, %v1333_v50  ;;  %v1345_v10 = vadd.f32 0.001143296, %v1344_v2  ;;  %v1311_v1 = vadd.f32 0.4994258, %v1310_v40  ;;  %v3513_v53 = vadd.f32 %v3393_v57, %v1180_v4 }
 0x1a2   : > { %v1784_v54 = vmul.f32 3.8918573e-05, %v3491_v19  ;;  %v1773_v51 = vmul.f32 2.1237322e-06, %v3491_v19  ;;  %v1300_v8 = vadd.f32 0.18741608, %v1299_v41  ;;  %v1278_v29 = vadd.f32 %v3483_v56, %v1277_v42 }
 0x1a3   : > { %v1346_v55 = vmul.f32 %v1345_v10, %v3472_v45  ;;  %v1312_v35 = vmul.f32 %v1311_v1, %v3441_v14  ;;  %v1335_v30 = vmul.f32 %v1334_v9, %v3472_v45  ;;  %v3536_v12 = vmul.f32 %v3513_v53, %v2561_v28 }
 0x1a4   : > { %v1785_v61 = vadd.f32 0.001143296, %v1784_v54  ;;  %v1213_v49 = vpop.f32.mrf.mxu3  ;;  %v1774_v3 = vadd.f32 0.00028619796, %v1773_v51  ;;  %v1301_v5 = vmul.f32 %v1300_v8, %v3441_v14  ;;  %v1767_v10 = vsel %vm1764_vm9, %v1766_v16, %v1762_v11 }
 0x1a5   : > { %v1347_v63 = vadd.f32 0.014752088, %v1346_v55  ;;  %v3516_v6 = vadd.f32 1.0, %v1312_v35  ;;  %v1336_v47 = vadd.f32 0.0036580483, %v1335_v30  ;;  %v3541_v2 = vadd.f32 %v3393_v57, %v1213_v49 }
 0x1a6   : > { %v1786_v36 = vmul.f32 %v1785_v61, %v3491_v19  ;;  %v1371_v39 = vmul.f32 %v3536_v12, %v3536_v12  ;;  %v1775_v1 = vmul.f32 %v1774_v3, %v3491_v19  ;;  %v1262_v4 = vadd.f32 1.1283791, %v1261_v48  ;;  %v1926_v3 = vld [vmem:[%s4317_s3 + $0x18] sm:$0xff] }
 0x1a7   : > { %v1348_v38 = vmul.f32 %v1347_v63, %v3472_v45  ;;  %2326 = vrcp.f32 %v3516_v6  ;;  %v1337_v62 = vmul.f32 %v1336_v47, %v3472_v45  ;;  %v3558_v0 = vmul.f32 %v3541_v2, %v2561_v28  ;;  %1991 = vmatpush.msra.mxu2 %v1926_v3  ;;  %2239 = vmatpush.msra.mxu3 %v1926_v3 }
 0x1a8   : > { %v1787_v40 = vadd.f32 0.014752088, %v1786_v36  ;;  %v3551_v24 = vmin.f32 %v1371_v39, 16.0  ;;  %v1286_v18 = vor.u32 1.1754944e-38, %v1285_v46  ;;  %v1768_v15 = vmul.f32 %v1767_v10, %v1743_v27  ;;  %v1183_v41 = vpop.f32.mrf.mxu1 }
 0x1a9   : > { %v1349_v44 = vadd.f32 0.112945676, %v1348_v38  ;;  %v1338_v55 = vadd.f32 0.05243302, %v1337_v62  ;;  %v1282_v38 = vsel %vm3567_vm12, %v3483_v56, %v1278_v29  ;;  %v1302_v54 = vadd.f32 1.1283791, %v1301_v5 }
 0x1aa   : > { %v1788_v20 = vmul.f32 %v1787_v40, %v3491_v19  ;;  %v1373_v35 = vmul.f32 2.1237322e-06, %v3551_v24  ;;  %v1384_v30 = vmul.f32 3.8918573e-05, %v3551_v24  ;;  %v1776_v31 = vadd.f32 0.0036580483, %v1775_v1 }
 0x1ab   : > { %v1350_v52 = vmul.f32 %v1349_v44, %v3472_v45  ;;  %v1339_v48 = vmul.f32 %v1338_v55, %v3472_v45  ;;  %v1811_v33 = vmul.f32 %v3558_v0, %v3558_v0  ;;  %v3586_v61 = vadd.f32 %v3393_v57, %v1183_v41 }
 0x1ac   : > { %v1789_v14 = vadd.f32 0.112945676, %v1788_v20  ;;  %v1374_v47 = vadd.f32 0.00028619796, %v1373_v35  ;;  %v1385_v44 = vadd.f32 0.001143296, %v1384_v30  ;;  %v1287_v56 = vsel %vm3571_vm13, %v1286_v18, %v1282_v38 }
 0x1ad   : > { %v1351_v50 = vadd.f32 0.4994258, %v1350_v52  ;;  %v3563_v63 = vpop.eup %2326  ;;  %v2205_v49 = vclamps-f32 %v1768_v15, 1.0  ;;  %v3591_v46 = vmin.f32 %v1811_v33, 16.0  ;;  %v1263_v8 = vmul.f32 %v1262_v4, %v3407_v22  ;;  %v1925_v18 = vld [vmem:[%s4317_s3 + $0x10] sm:$0xff] }
 0x1ae   : > { %v1790_v51 = vmul.f32 %v1789_v14, %v3491_v19  ;;  %v1315_v26 = vmul.f32 %v3563_v63, %v3516_v6  ;;  %v1386_v42 = vmul.f32 %v1385_v44, %v3551_v24  ;;  %v3598_v52 = vmul.f32 0.5, %v3461_v7  ;;  %1992 = vmatpush.msra.mxu2 %v1925_v18  ;;  %2240 = vmatpush.msra.mxu3 %v1925_v18 }
 0x1af   : > { %v1352_v9 = vmul.f32 %v1351_v50, %v3472_v45  ;;  %v1777_v11 = vmul.f32 %v1776_v31, %v3491_v19  ;;  %v1340_v36 = vadd.f32 0.18741608, %v1339_v48  ;;  %v1375_v50 = vmul.f32 %v1374_v47, %v3551_v24  ;;  %v1924_v48 = vld [vmem:[%s4317_s3 + $0x8] sm:$0xff] }
 0x1b0   : > { %v1791_v13 = vadd.f32 0.4994258, %v1790_v51  ;;  %v1387_v16 = vadd.f32 0.014752088, %v1386_v42  ;;  %v3606_v22 = vmul.f32 %v1287_v56, %v1263_v8  ;;  %v3609_v58 = vmul.f32 %v1302_v54, %v3433_v23  ;;  %1993 = vmatpush.msra.mxu2 %v1924_v48  ;;  %2241 = vmatpush.msra.mxu3 %v1924_v48 }
 0x1b1   : > { %v3554_v25 = vadd.f32 1.0, %v1352_v9  ;;  %v1316_v7 = vsub.f32 1.0, %v1315_v26  ;;  %v3613_v40 = vmul.f32 %v3586_v61, %v2561_v28  ;;  %v1903_v39 = vadd.f32 1.0, %v2205_v49 }
 0x1b2   : > { %v1792_v62 = vmul.f32 %v1791_v13, %v3491_v19  ;;  %v1388_v29 = vmul.f32 %v1387_v16, %v3551_v24  ;;  %v1813_v5 = vmul.f32 2.1237322e-06, %v3591_v46  ;;  %v1824_v9 = vmul.f32 3.8918573e-05, %v3591_v46 }
 0x1b3   : > { %2328 = vrcp.f32 %v3554_v25  ;;  %vm1319_vm14 = vweird.f32 %v3516_v6  ;;  %v1323_v1 = vand.u32 2147483647, %v3516_v6  ;;  %v1325_v23 = vand.u32 2147483648, %v3516_v6 }
 0x1b4   : > { %v1778_v20 = vadd.f32 0.05243302, %v1777_v11  ;;  %v1341_v27 = vmul.f32 %v1340_v36, %v3472_v45  ;;  %v3624_v55 = vadd.f32 1.0, %v1792_v62  ;;  %v1376_v14 = vadd.f32 0.0036580483, %v1375_v50  ;;  %v1923_v36 = vld [vmem:[%s4317_s3] sm:$0xff] }
 0x1b5   : > { %v1389_v35 = vadd.f32 0.112945676, %v1388_v29  ;;  %v1317_v30 = vmul.f32 %v3563_v63, %v1316_v7  ;;  %v3628_v4 = vmul.f32 0.5, %v3513_v53  ;;  %v1825_v43 = vadd.f32 0.001143296, %v1824_v9  ;;  %1994 = vmatpush.msra.mxu2 %v1923_v36  ;;  %2242 = vmatpush.msra.mxu3 %v1923_v36 }
 0x1b6   : > { %v1411_v37 = vmul.f32 %v3613_v40, %v3613_v40  ;;  %v1919_v15 = vmul.f32 %v1903_v39, %v3504_v60  ;;  %v1814_v38 = vadd.f32 0.00028619796, %v1813_v5  ;;  %vm1320_vm15 = vweird.f32 %v3563_v63  ;;  %v1216_v60 = vpop.f32.mrf.mxu3 }
 0x1b7   : > { %v1390_v41 = vmul.f32 %v1389_v35, %v3551_v24  ;;  %vm3640_vm1 = vcmp.eq.f32.partialorder %v1323_v1, 8.507059e+37  ;;  %v1779_v54 = vmul.f32 %v1778_v20, %v3491_v19  ;;  %v1826_v31 = vmul.f32 %v1825_v43, %v3591_v46  ;;  %vm3672_vm2 = vmor %vm1319_vm14, %vm1320_vm15 }
 0x1b8   : > { %v3646_v51 = vmin.f32 %v1411_v37, 16.0  ;;  %v1342_v47 = vadd.f32 1.1283791, %v1341_v27  ;;  %2330 = vrcp.f32 %v3624_v55  ;;  %v1377_v44 = vmul.f32 %v1376_v14, %v3551_v24  ;;  %2221 = vmatmul.msk.f32.vlgmr.msra.gmra.mxu3 %vm275_vm0, %v1919_v15  ;;  %v1186_v37 = vpop.f32.mrf.mxu1 }
 0x1b9   : > { %v3618_v10 = vpop.eup %2328  ;;  %v1391_v33 = vadd.f32 0.4994258, %v1390_v41  ;;  %v1318_v26 = vadd.f32 %v3563_v63, %v1317_v30  ;;  %v1827_v13 = vadd.f32 0.014752088, %v1826_v31  ;;  %v1326_v42 = vor.u32 1.1754944e-38, %v1325_v23 }
 0x1ba   : > { %v1355_v45 = vmul.f32 %v3618_v10, %v3554_v25  ;;  %v1413_v56 = vmul.f32 2.1237322e-06, %v3646_v51  ;;  %v1424_v49 = vmul.f32 3.8918573e-05, %v3646_v51  ;;  %v1815_v11 = vmul.f32 %v1814_v38, %v3591_v46 }
 0x1bb   : > { %v3658_v3 = vadd.f32 %v3393_v57, %v1216_v60  ;;  %v1780_v62 = vadd.f32 0.18741608, %v1779_v54  ;;  %v1392_v50 = vmul.f32 %v1391_v33, %v3551_v24  ;;  %v3665_v16 = vmul.f32 0.5, %v3541_v2 }
 0x1bc   : > { %v1356_v8 = vsub.f32 1.0, %v1355_v45  ;;  %v1828_v7 = vmul.f32 %v1827_v13, %v3591_v46  ;;  %v3677_v29 = vmul.f32 %v1342_v47, %v3458_v17  ;;  %v1378_v5 = vadd.f32 0.05243302, %v1377_v44 }
 0x1bd   : > { %v3680_v9 = vmul.f32 0.5, %v3586_v61  ;;  %v1414_v2 = vadd.f32 0.00028619796, %v1413_v56  ;;  %v1322_v1 = vsel %vm3672_vm2, %v3563_v63, %v1318_v26  ;;  %v3686_v23 = vadd.f32 1.0, %v1392_v50 }
 0x1be   : > { %v1829_v6 = vadd.f32 0.112945676, %v1828_v7  ;;  %v1425_v20 = vadd.f32 0.001143296, %v1424_v49  ;;  %v3688_v27 = vpop.eup %2330  ;;  %v1357_v17 = vmul.f32 %v3618_v10, %v1356_v8  ;;  %vm1359_vm3 = vweird.f32 %v3554_v25 }
 0x1bf   : > { %v1816_v14 = vadd.f32 0.0036580483, %v1815_v11  ;;  %v3694_v61 = vmul.f32 %v3658_v3, %v2561_v28  ;;  %v1363_v35 = vand.u32 2147483647, %v3554_v25  ;;  %v1365_v30 = vand.u32 2147483648, %v3554_v25 }
 0x1c0   : > { %v1781_v63 = vmul.f32 %v1780_v62, %v3491_v19  ;;  %v1415_v43 = vmul.f32 %v1414_v2, %v3646_v51  ;;  %v1327_v18 = vsel %vm3640_vm1, %v1326_v42, %v1322_v1  ;;  %v1379_v15 = vmul.f32 %v1378_v5, %v3551_v24 }
 0x1c1   : > { %2332 = vrcp.f32 %v3686_v23  ;;  %v1830_v45 = vmul.f32 %v1829_v6, %v3591_v46  ;;  %vm1360_vm4 = vweird.f32 %v3618_v10  ;;  %v1795_v41 = vmul.f32 %v3688_v27, %v3624_v55 }
 0x1c2   : > { %v1426_v38 = vmul.f32 %v1425_v20, %v3646_v51  ;;  %v1851_v19 = vmul.f32 %v3694_v61, %v3694_v61  ;;  %v1358_v54 = vadd.f32 %v3618_v10, %v1357_v17  ;;  %v1817_v53 = vmul.f32 %v1816_v14, %v3591_v46  ;;  %vm3730_vm6 = vmor %vm1359_vm3, %vm1360_vm4 }
 0x1c3   : > { %v1831_v31 = vadd.f32 0.4994258, %v1830_v45  ;;  %v3714_v60 = vadd.f32 %v3393_v57, %v1186_v37  ;;  %vm3716_vm5 = vcmp.eq.f32.partialorder %v1363_v35, 8.507059e+37  ;;  %v1416_v47 = vadd.f32 0.0036580483, %v1415_v43 }
 0x1c4   : > { %v1427_v44 = vadd.f32 0.014752088, %v1426_v38  ;;  %v3720_v33 = vmin.f32 %v1851_v19, 16.0  ;;  %v1366_v26 = vor.u32 1.1754944e-38, %v1365_v30  ;;  %v1782_v13 = vadd.f32 1.1283791, %v1781_v63 }
 0x1c5   : > { %v1380_v56 = vadd.f32 0.18741608, %v1379_v15  ;;  %v1832_v49 = vmul.f32 %v1831_v31, %v3591_v46  ;;  %v3724_v42 = vmul.f32 %v1327_v18, %v3609_v58  ;;  %v1796_v11 = vsub.f32 1.0, %v1795_v41  ;;  %v1189_v41 = vpop.f32.mrf.mxu1 }
 0x1c6   : > { %v1428_v36 = vmul.f32 %v1427_v44, %v3646_v51  ;;  %v1864_v62 = vmul.f32 3.8918573e-05, %v3720_v33  ;;  %v1362_v58 = vsel %vm3730_vm6, %v3618_v10, %v1358_v54  ;;  %v1818_v7 = vadd.f32 0.05243302, %v1817_v53 }
 0x1c7   : > { %v3736_v50 = vpop.eup %2332  ;;  %v1853_v39 = vmul.f32 2.1237322e-06, %v3720_v33  ;;  %v3744_v25 = vmul.f32 %v3714_v60, %v2561_v28  ;;  %v3746_v5 = vadd.f32 1.0, %v1832_v49  ;;  %v1417_v2 = vmul.f32 %v1416_v47, %v3646_v51 }
 0x1c8   : > { %v1429_v1 = vadd.f32 0.112945676, %v1428_v36  ;;  %v1865_v6 = vadd.f32 0.001143296, %v1864_v62  ;;  %v3750_v20 = vmul.f32 %v1782_v13, %v3476_v21  ;;  %vm1799_vm7 = vweird.f32 %v3624_v55 }
 0x1c9   : > { %v1803_v10 = vand.u32 2147483647, %v3624_v55  ;;  %v1381_v17 = vmul.f32 %v1380_v56, %v3551_v24  ;;  %v1797_v14 = vmul.f32 %v3688_v27, %v1796_v11  ;;  %v1805_v35 = vand.u32 2147483648, %v3624_v55 }
 0x1ca   : > { %v1395_v30 = vmul.f32 %v3736_v50, %v3686_v23  ;;  %v1430_v63 = vmul.f32 %v1429_v1, %v3646_v51  ;;  %v1367_v43 = vsel %vm3716_vm5, %v1366_v26, %v1362_v58  ;;  %v1819_v21 = vmul.f32 %v1818_v7, %v3591_v46 }
 0x1cb   : > { %v1866_v37 = vmul.f32 %v1865_v6, %v3720_v33  ;;  %v1451_v18 = vmul.f32 %v3744_v25, %v3744_v25  ;;  %2334 = vrcp.f32 %v3746_v5  ;;  %v1418_v24 = vadd.f32 0.05243302, %v1417_v2 }
 0x1cc   : > { %v1431_v15 = vadd.f32 0.4994258, %v1430_v63  ;;  %v1854_v45 = vadd.f32 0.00028619796, %v1853_v39  ;;  %vm3767_vm8 = vcmp.eq.f32.partialorder %v1803_v10, 8.507059e+37  ;;  %v1798_v31 = vadd.f32 %v3688_v27, %v1797_v14 }
 0x1cd   : > { %v1382_v19 = vadd.f32 1.1283791, %v1381_v17  ;;  %v1867_v54 = vadd.f32 0.014752088, %v1866_v37  ;;  %v3771_v53 = vmin.f32 %v1451_v18, 16.0  ;;  %vm1800_vm9 = vweird.f32 %v3688_v27 }
 0x1ce   : > { %v1806_v48 = vor.u32 1.1754944e-38, %v1805_v35  ;;  %v1396_v47 = vsub.f32 1.0, %v1395_v30  ;;  %v3776_v44 = vmul.f32 %v1367_v43, %v3677_v29  ;;  %v1432_v26 = vmul.f32 %v1431_v15, %v3646_v51  ;;  %vm3788_vm10 = vmor %vm1799_vm7, %vm1800_vm9  ;;  %v1192_v15 = vpop.f32.mrf.mxu1 }
 0x1cf   : > { %v1868_v13 = vmul.f32 %v1867_v54, %v3720_v33  ;;  %v1464_v56 = vmul.f32 3.8918573e-05, %v3771_v53  ;;  %v1820_v49 = vadd.f32 0.18741608, %v1819_v21  ;;  %v1419_v8 = vmul.f32 %v1418_v24, %v3646_v51 }
 0x1d0   : > { %v3783_v11 = vmul.f32 0.5, %v3658_v3  ;;  %v1855_v36 = vmul.f32 %v1854_v45, %v3720_v33  ;;  %v3793_v29 = vmul.f32 %v1382_v19, %v3536_v12  ;;  %v1403_v58 = vand.u32 2147483647, %v3686_v23 }
 0x1d1   : > { %v1869_v7 = vadd.f32 0.112945676, %v1868_v13  ;;  %v3797_v39 = vadd.f32 %v3393_v57, %v1189_v41  ;;  %v3799_v2 = vpop.eup %2334  ;;  %v1802_v3 = vsel %vm3788_vm10, %v3688_v27, %v1798_v31  ;;  %v1397_v55 = vmul.f32 %v3736_v50, %v1396_v47 }
 0x1d2   : > { %v1453_v1 = vmul.f32 2.1237322e-06, %v3771_v53  ;;  %v1465_v6 = vadd.f32 0.001143296, %v1464_v56  ;;  %vm1399_vm11 = vweird.f32 %v3686_v23  ;;  %v1405_v12 = vand.u32 2147483648, %v3686_v23 }
 0x1d3   : > { %v3808_v10 = vadd.f32 1.0, %v1432_v26  ;;  %v2193_v17 = vclamps-f32 %v3606_v22, 1.0  ;;  %v1821_v14 = vmul.f32 %v1820_v49, %v3591_v46  ;;  %v1420_v35 = vadd.f32 0.18741608, %v1419_v8 }
 0x1d4   : > { %v1856_v30 = vadd.f32 0.0036580483, %v1855_v36  ;;  %v1870_v63 = vmul.f32 %v1869_v7, %v3720_v33  ;;  %v1807_v27 = vsel %vm3767_vm8, %v1806_v48, %v1802_v3  ;;  %vm3815_vm12 = vcmp.eq.f32.partialorder %v1403_v58, 8.507059e+37 }
 0x1d5   : > { %v1835_v21 = vmul.f32 %v3799_v2, %v3746_v5  ;;  %v1466_v37 = vmul.f32 %v1465_v6, %v3771_v53  ;;  %v3824_v22 = vmul.f32 %v3797_v39, %v2561_v28  ;;  %v1398_v46 = vadd.f32 %v3736_v50, %v1397_v55 }
 0x1d6   : > { %vm1400_vm13 = vweird.f32 %v3736_v50  ;;  %v1871_v18 = vadd.f32 0.4994258, %v1870_v63  ;;  %v1454_v24 = vadd.f32 0.00028619796, %v1453_v1  ;;  %2336 = vrcp.f32 %v3808_v10 }
 0x1d7   : > { %v1467_v45 = vadd.f32 0.014752088, %v1466_v37  ;;  %v1491_v41 = vmul.f32 %v3824_v22, %v3824_v22  ;;  %v1891_v38 = vadd.f32 1.0, %v2193_v17  ;;  %v1822_v19 = vadd.f32 1.1283791, %v1821_v14  ;;  %vm3845_vm14 = vmor %vm1399_vm11, %vm1400_vm13 }
 0x1d8   : > { %v1421_v54 = vmul.f32 %v1420_v35, %v3646_v51  ;;  %v1857_v31 = vmul.f32 %v1856_v30, %v3720_v33  ;;  %v1872_v48 = vmul.f32 %v1871_v18, %v3720_v33  ;;  %v1836_v47 = vsub.f32 1.0, %v1835_v21  ;;  %v1195_v18 = vpop.f32.mrf.mxu1 }
 0x1d9   : > { %v1468_v26 = vmul.f32 %v1467_v45, %v3771_v53  ;;  %v3835_v13 = vmin.f32 %v1491_v41, 16.0  ;;  %v1907_v56 = vmul.f32 %v1891_v38, %v3494_v59  ;;  %v3839_v49 = vmul.f32 %v1807_v27, %v3750_v20 }
 0x1da   : > { %v1406_v8 = vor.u32 1.1754944e-38, %v1405_v12  ;;  %v3850_v36 = vmul.f32 0.5, %v3714_v60  ;;  %v1455_v62 = vmul.f32 %v1454_v24, %v3771_v53  ;;  %v1402_v59 = vsel %vm3845_vm14, %v3736_v50, %v1398_v46 }
 0x1db   : > { %v3856_v20 = vadd.f32 1.0, %v1872_v48  ;;  %v1469_v58 = vadd.f32 0.112945676, %v1468_v26  ;;  %2209 = vmatmul.msk.f32.vlgmr.msra.gmra.mxu2 %vm275_vm0, %v1907_v56  ;;  %v3860_v23 = vadd.f32 %v3393_v57, %v1192_v15  ;;  %v3863_v7 = vmul.f32 %v1822_v19, %v3558_v0 }
 0x1dc   : > { %v1858_v3 = vadd.f32 0.05243302, %v1857_v31  ;;  %v1493_v60 = vmul.f32 2.1237322e-06, %v3835_v13  ;;  %v1504_v55 = vmul.f32 3.8918573e-05, %v3835_v13  ;;  %v3867_v1 = vpop.eup %2336  ;;  %v1837_v50 = vmul.f32 %v3799_v2, %v1836_v47 }
 0x1dd   : > { %v1843_v6 = vand.u32 2147483647, %v3746_v5  ;;  %v1845_v12 = vand.u32 2147483648, %v3746_v5  ;;  %v1422_v17 = vadd.f32 1.1283791, %v1421_v54  ;;  %v1407_v14 = vsel %vm3815_vm12, %v1406_v8, %v1402_v59 }
 0x1de   : > { %v1456_v35 = vadd.f32 0.0036580483, %v1455_v62  ;;  %v1470_v0 = vmul.f32 %v1469_v58, %v3771_v53  ;;  %v1494_v30 = vadd.f32 0.00028619796, %v1493_v60  ;;  %vm1840_vm15 = vweird.f32 %v3799_v2 }
 0x1df   : > { %2338 = vrcp.f32 %v3856_v20  ;;  %v1505_v63 = vadd.f32 0.001143296, %v1504_v55  ;;  %v3879_v27 = vmul.f32 %v3860_v23, %v2561_v28  ;;  %v1435_v21 = vmul.f32 %v3867_v1, %v3808_v10 }
 0x1e0   : > { %v1859_v37 = vmul.f32 %v1858_v3, %v3720_v33  ;;  %v1471_v43 = vadd.f32 0.4994258, %v1470_v0  ;;  %v1495_v46 = vmul.f32 %v1494_v30, %v3835_v13  ;;  %v1838_v24 = vadd.f32 %v3799_v2, %v1837_v50 }
 0x1e1   : > { %v1506_v15 = vmul.f32 %v1505_v63, %v3835_v13  ;;  %v1531_v45 = vmul.f32 %v3879_v27, %v3879_v27  ;;  %v2194_v41 = vclamps-f32 %v3724_v42, 1.0  ;;  %vm1839_vm1 = vweird.f32 %v3746_v5 }
 0x1e2   : > { %vm3891_vm2 = vcmp.eq.f32.partialorder %v1843_v6, 8.507059e+37  ;;  %v1457_v19 = vmul.f32 %v1456_v35, %v3771_v53  ;;  %v1472_v54 = vmul.f32 %v1471_v43, %v3771_v53  ;;  %v1846_v31 = vor.u32 1.1754944e-38, %v1845_v12  ;;  %vm3904_vm3 = vmor %vm1839_vm1, %vm1840_vm15  ;;  %v1198_v43 = vpop.f32.mrf.mxu1 }
 0x1e3   : > { %v1507_v48 = vadd.f32 0.014752088, %v1506_v15  ;;  %v3897_v47 = vmin.f32 %v1531_v45, 16.0  ;;  %v1892_v26 = vadd.f32 1.0, %v2194_v41  ;;  %v3900_v56 = vmul.f32 %v1407_v14, %v3793_v29 }
 0x1e4   : > { %v3909_v5 = vmul.f32 %v1422_v17, %v3613_v40  ;;  %v1436_v51 = vsub.f32 1.0, %v1435_v21  ;;  %v1496_v8 = vadd.f32 0.0036580483, %v1495_v46  ;;  %v1842_v59 = vsel %vm3904_vm3, %v3799_v2, %v1838_v24 }
 0x1e5   : > { %v3911_v62 = vpop.eup %2338  ;;  %v1860_v58 = vadd.f32 0.18741608, %v1859_v37  ;;  %v3917_v29 = vmul.f32 0.5, %v3797_v39  ;;  %v1508_v3 = vmul.f32 %v1507_v48, %v3835_v13  ;;  %v1458_v60 = vadd.f32 0.05243302, %v1457_v19 }
 0x1e6   : > { %v3920_v55 = vadd.f32 1.0, %v1472_v54  ;;  %v1544_v40 = vmul.f32 3.8918573e-05, %v3897_v47  ;;  %v1908_v50 = vmul.f32 %v1892_v26, %v3501_v34  ;;  %vm1439_vm4 = vweird.f32 %v3808_v10 }
 0x1e7   : > { %v1443_v6 = vand.u32 2147483647, %v3808_v10  ;;  %v1533_v12 = vmul.f32 2.1237322e-06, %v3897_v47  ;;  %v3928_v2 = vadd.f32 %v3393_v57, %v1195_v18  ;;  %v1437_v39 = vmul.f32 %v3867_v1, %v1436_v51 }
 0x1e8   : > { %v1875_v17 = vmul.f32 %v3911_v62, %v3856_v20  ;;  %v1497_v14 = vmul.f32 %v1496_v8, %v3835_v13  ;;  %v1509_v35 = vadd.f32 0.112945676, %v1508_v3  ;;  %2210 = vmatmul.msk.f32.gmra.mxu2 %vm275_vm0, %v1908_v50  ;;  %v1847_v34 = vsel %vm3891_vm2, %v1846_v31, %v1842_v59 }
 0x1e9   : > { %v1445_v0 = vand.u32 2147483648, %v3808_v10  ;;  %v1861_v30 = vmul.f32 %v1860_v58, %v3720_v33  ;;  %v1545_v63 = vadd.f32 0.001143296, %v1544_v40  ;;  %vm1440_vm5 = vweird.f32 %v3867_v1 }
 0x1ea   : > { %v1459_v21 = vmul.f32 %v1458_v60, %v3771_v53  ;;  %2340 = vrcp.f32 %v3920_v55  ;;  %v1510_v37 = vmul.f32 %v1509_v35, %v3835_v13  ;;  %v1534_v46 = vadd.f32 0.00028619796, %v1533_v12  ;;  %vm3963_vm7 = vmor %vm1439_vm4, %vm1440_vm5 }
 0x1eb   : > { %v1546_v18 = vmul.f32 %v1545_v63, %v3897_v47  ;;  %v3946_v24 = vmul.f32 %v3928_v2, %v2561_v28  ;;  %v2195_v15 = vclamps-f32 %v3776_v44, 1.0  ;;  %v1438_v33 = vadd.f32 %v3867_v1, %v1437_v39 }
 0x1ec   : > { %v1876_v45 = vsub.f32 1.0, %v1875_v17  ;;  %v1498_v41 = vadd.f32 0.05243302, %v1497_v14  ;;  %v1511_v38 = vadd.f32 0.4994258, %v1510_v37  ;;  %v3953_v48 = vadd.f32 %v3393_v57, %v1198_v43 }
 0x1ed   : > { %v1547_v19 = vadd.f32 0.014752088, %v1546_v18  ;;  %v1571_v54 = vmul.f32 %v3946_v24, %v3946_v24  ;;  %v1893_v31 = vadd.f32 1.0, %v2195_v15  ;;  %vm3955_vm6 = vcmp.eq.f32.partialorder %v1443_v6, 8.507059e+37 }
 0x1ee   : > { %v1446_v42 = vor.u32 1.1754944e-38, %v1445_v0  ;;  %v1862_v51 = vadd.f32 1.1283791, %v1861_v30  ;;  %v1460_v44 = vadd.f32 0.18741608, %v1459_v21  ;;  %v1512_v59 = vmul.f32 %v1511_v38, %v3835_v13 }
 0x1ef   : > { %v1535_v57 = vmul.f32 %v1534_v46, %v3897_v47  ;;  %v1548_v58 = vmul.f32 %v1547_v19, %v3897_v47  ;;  %v3970_v3 = vmin.f32 %v1571_v54, 16.0  ;;  %v3975_v40 = vmul.f32 %v1847_v34, %v3863_v7 }
 0x1f0   : > { %v3972_v60 = vpop.eup %2340  ;;  %v1442_v10 = vsel %vm3963_vm7, %v3867_v1, %v1438_v33  ;;  %v1877_v50 = vmul.f32 %v3911_v62, %v1876_v45  ;;  %v1909_v6 = vmul.f32 %v1893_v31, %v3595_v32  ;;  %v1499_v12 = vmul.f32 %v1498_v41, %v3835_v13 }
 0x1f1   : > { %v3983_v39 = vadd.f32 1.0, %v1512_v59  ;;  %v1549_v17 = vadd.f32 0.112945676, %v1548_v58  ;;  %v3987_v14 = vmul.f32 %v3953_v48, %v2561_v28  ;;  %v1863_v7 = vmul.f32 %v1862_v51, %v3694_v61 }
 0x1f2   : > { %v1883_v35 = vand.u32 2147483647, %v3856_v20  ;;  %v1461_v34 = vmul.f32 %v1460_v44, %v3771_v53  ;;  %v1584_v1 = vmul.f32 3.8918573e-05, %v3970_v3  ;;  %2211 = vmatmul.msk.f32.gmra.mxu2 %vm275_vm0, %v1909_v6  ;;  %v1447_v32 = vsel %vm3955_vm6, %v1446_v42, %v1442_v10 }
 0x1f3   : > { %vm1880_vm8 = vweird.f32 %v3911_v62  ;;  %v1885_v0 = vand.u32 2147483648, %v3856_v20  ;;  %v1536_v30 = vadd.f32 0.0036580483, %v1535_v57  ;;  %v1878_v63 = vadd.f32 %v3911_v62, %v1877_v50 }
 0x1f4   : > { %v1475_v61 = vmul.f32 %v3972_v60, %v3920_v55  ;;  %2342 = vrcp.f32 %v3983_v39  ;;  %v1550_v53 = vmul.f32 %v1549_v17, %v3897_v47  ;;  %v1500_v21 = vadd.f32 0.18741608, %v1499_v12  ;;  %v1201_v17 = vpop.f32.mrf.mxu1 }
 0x1f5   : > { %v1573_v37 = vmul.f32 2.1237322e-06, %v3970_v3  ;;  %v1585_v43 = vadd.f32 0.001143296, %v1584_v1  ;;  %v1611_v46 = vmul.f32 %v3987_v14, %v3987_v14  ;;  %vm1879_vm9 = vweird.f32 %v3856_v20 }
 0x1f6   : > { %vm4007_vm10 = vcmp.eq.f32.partialorder %v1883_v35, 8.507059e+37  ;;  %v1462_v15 = vadd.f32 1.1283791, %v1461_v34  ;;  %v1551_v33 = vadd.f32 0.4994258, %v1550_v53  ;;  %vm4013_vm11 = vmor %vm1879_vm9, %vm1880_vm8  ;;  %v1886_v41 = vor.u32 1.1754944e-38, %v1885_v0 }
 0x1f7   : > { %v1537_v38 = vmul.f32 %v1536_v30, %v3897_v47  ;;  %v1586_v19 = vmul.f32 %v1585_v43, %v3970_v3  ;;  %v4019_v54 = vmin.f32 %v1611_v46, 16.0  ;;  %v4022_v20 = vmul.f32 %v1447_v32, %v3909_v5 }
 0x1f8   : > { %v1882_v31 = vsel %vm4013_vm11, %v3911_v62, %v1878_v63  ;;  %v1476_v26 = vsub.f32 1.0, %v1475_v61  ;;  %v1552_v42 = vmul.f32 %v1551_v33, %v3897_v47  ;;  %v1501_v51 = vmul.f32 %v1500_v21, %v3835_v13  ;;  %v4054_v61 = vld [vmem:[%s4318_s4 + $0x1] ss:$0 sm:$0xff] }
 0x1f9   : > { %v1574_v44 = vadd.f32 0.00028619796, %v1573_v37  ;;  %v1587_v8 = vadd.f32 0.014752088, %v1586_v19  ;;  %v1624_v59 = vmul.f32 3.8918573e-05, %v4019_v54  ;;  %v4033_v58 = vmul.f32 %v1462_v15, %v3744_v25 }
 0x1fa   : > { %v4030_v57 = vpop.eup %2342  ;;  %v1483_v5 = vand.u32 2147483647, %v3920_v55  ;;  %v4036_v10 = vadd.f32 1.0, %v1552_v42  ;;  %v2206_v62 = vclamps-f32 %v3839_v49, 1.0  ;;  %v1485_v50 = vand.u32 2147483648, %v3920_v55 }
 0x1fb   : > { %v1538_v6 = vadd.f32 0.05243302, %v1537_v38  ;;  %v1588_v13 = vmul.f32 %v1587_v8, %v3970_v3  ;;  %v1625_v12 = vadd.f32 0.001143296, %v1624_v59  ;;  %v1887_v35 = vsel %vm4007_vm10, %v1886_v41, %v1882_v31 }
 0x1fc   : > { %v1477_v34 = vmul.f32 %v3972_v60, %v1476_v26  ;;  %vm1479_vm12 = vweird.f32 %v3920_v55  ;;  %2344 = vrcp.f32 %v4036_v10  ;;  %v1502_v25 = vadd.f32 1.1283791, %v1501_v51 }
 0x1fd   : > { %v1515_v49 = vmul.f32 %v4030_v57, %v3983_v39  ;;  %v1575_v1 = vmul.f32 %v1574_v44, %v3970_v3  ;;  %v1613_v32 = vmul.f32 2.1237322e-06, %v4019_v54  ;;  %v1589_v0 = vadd.f32 0.112945676, %v1588_v13 }
 0x1fe   : > { %v1626_v30 = vmul.f32 %v1625_v12, %v4019_v54  ;;  %v1904_v63 = vadd.f32 1.0, %v2206_v62  ;;  %v4057_v53 = vadd.f32 %v4054_v61, %v1201_v17  ;;  %v4059_v21 = vmul.f32 %v1887_v35, %v1863_v7 }
 0x1ff   : > { %vm1480_vm13 = vweird.f32 %v3972_v60  ;;  %vm4062_vm14 = vcmp.eq.f32.partialorder %v1483_v5, 8.507059e+37  ;;  %v1486_v43 = vor.u32 1.1754944e-38, %v1485_v50  ;;  %v1539_v46 = vmul.f32 %v1538_v6, %v3897_v47 }
 0x200   : > { %v1478_v18 = vadd.f32 %v3972_v60, %v1477_v34  ;;  %v1590_v15 = vmul.f32 %v1589_v0, %v3970_v3  ;;  %v1627_v33 = vadd.f32 0.014752088, %v1626_v30  ;;  %v1920_v45 = vmul.f32 %v1904_v63, %v3598_v52  ;;  %vm4086_vm15 = vmor %vm1479_vm12, %vm1480_vm13 }
 0x201   : > { %v4071_v41 = vmul.f32 %v1502_v25, %v3824_v22  ;;  %v1516_v7 = vsub.f32 1.0, %v1515_v49  ;;  %v1576_v38 = vadd.f32 0.0036580483, %v1575_v1  ;;  %v2196_v19 = vclamps-f32 %v3900_v56, 1.0 }
 0x202   : > { %v4074_v31 = vpop.eup %2344  ;;  %v1591_v26 = vadd.f32 0.4994258, %v1590_v15  ;;  %v1614_v42 = vadd.f32 0.00028619796, %v1613_v32  ;;  %v1628_v51 = vmul.f32 %v1627_v33, %v4019_v54  ;;  %2222 = vmatmul.msk.f32.gmra.mxu3 %vm275_vm0, %v1920_v45  ;;  %v4080_v44 = vmul.f32 %v4057_v53, %v2561_v28 }
 0x203   : > { %vm1519_vm1 = vweird.f32 %v3983_v39  ;;  %v1523_v22 = vand.u32 2147483647, %v3983_v39  ;;  %v1540_v56 = vadd.f32 0.18741608, %v1539_v46  ;;  %v1555_v8 = vmul.f32 %v4074_v31, %v4036_v10 }
 0x204   : > { %v1482_v59 = vsel %vm4086_vm15, %v3972_v60, %v1478_v18  ;;  %v1525_v5 = vand.u32 2147483648, %v3983_v39  ;;  %v1592_v55 = vmul.f32 %v1591_v26, %v3970_v3  ;;  %v1629_v62 = vadd.f32 0.112945676, %v1628_v51 }
 0x205   : > { %v1517_v50 = vmul.f32 %v4030_v57, %v1516_v7  ;;  %v1577_v6 = vmul.f32 %v1576_v38, %v3970_v3  ;;  %v1894_v13 = vadd.f32 1.0, %v2196_v19  ;;  %v1651_v12 = vmul.f32 %v4080_v44, %v4080_v44  ;;  %v1204_v38 = vpop.f32.mrf.mxu1 }
 0x206   : > { %v4103_v17 = vadd.f32 1.0, %v1592_v55  ;;  %v1615_v35 = vmul.f32 %v1614_v42, %v4019_v54  ;;  %v1630_v34 = vmul.f32 %v1629_v62, %v4019_v54  ;;  %v2207_v60 = vclamps-f32 %v3975_v40, 1.0 }
 0x207   : > { %v1541_v25 = vmul.f32 %v1540_v56, %v3897_v47  ;;  %v1556_v49 = vsub.f32 1.0, %v1555_v8  ;;  %v1910_v1 = vmul.f32 %v1894_v13, %v3628_v4  ;;  %v4110_v32 = vmin.f32 %v1651_v12, 16.0 }
 0x208   : > { %v1487_v0 = vsel %vm4062_vm14, %v1486_v43, %v1482_v59  ;;  %vm1520_vm2 = vweird.f32 %v4030_v57  ;;  %vm4115_vm3 = vcmp.eq.f32.partialorder %v1523_v22, 8.507059e+37  ;;  %2346 = vrcp.f32 %v4103_v17 }
 0x209   : > { %v1518_v40 = vadd.f32 %v4030_v57, %v1517_v50  ;;  %v1578_v63 = vadd.f32 0.05243302, %v1577_v6  ;;  %v1631_v47 = vadd.f32 0.4994258, %v1630_v34  ;;  %2212 = vmatmul.msk.f32.gmra.mxu2 %vm275_vm0, %v1910_v1  ;;  %v1653_v4 = vmul.f32 2.1237322e-06, %v4110_v32  ;;  %vm4133_vm4 = vmor %vm1519_vm1, %vm1520_vm2 }
 0x20a   : > { %v1526_v46 = vor.u32 1.1754944e-38, %v1525_v5  ;;  %v1616_v18 = vadd.f32 0.0036580483, %v1615_v35  ;;  %v1664_v37 = vmul.f32 3.8918573e-05, %v4110_v32  ;;  %v1905_v43 = vadd.f32 1.0, %v2207_v60 }
 0x20b   : > { %v1488_v15 = vmul.f32 %v1487_v0, %v4033_v58  ;;  %v4125_v33 = vadd.f32 1.1283791, %v1541_v25  ;;  %v1557_v45 = vmul.f32 %v4074_v31, %v1556_v49  ;;  %v1632_v7 = vmul.f32 %v1631_v47, %v4019_v54 }
 0x20c   : > { %v1654_v26 = vadd.f32 0.00028619796, %v1653_v4  ;;  %v1665_v42 = vadd.f32 0.001143296, %v1664_v37  ;;  %v1921_v51 = vmul.f32 %v1905_v43, %v3665_v16  ;;  %v2197_v58 = vclamps-f32 %v4022_v20, 1.0 }
 0x20d   : > { %v1522_v52 = vsel %vm4133_vm4, %v4030_v57, %v1518_v40  ;;  %v1563_v22 = vand.u32 2147483647, %v4036_v10  ;;  %v1579_v56 = vmul.f32 %v1578_v63, %v3970_v3  ;;  %v4144_v8 = vadd.f32 1.0, %v1632_v7 }
 0x20e   : > { %v4146_v39 = vpop.eup %2346  ;;  %v1617_v59 = vmul.f32 %v1616_v18, %v4019_v54  ;;  %v1666_v5 = vmul.f32 %v1665_v42, %v4110_v32  ;;  %2223 = vmatmul.msk.f32.gmra.mxu3 %vm275_vm0, %v1921_v51  ;;  %v1895_v16 = vadd.f32 1.0, %v2197_v58  ;;  %v4152_v20 = vadd.f32 %v4054_v61, %v1204_v38 }
 0x20f   : > { %vm1559_vm5 = vweird.f32 %v4036_v10  ;;  %v1595_v57 = vmul.f32 %v4146_v39, %v4103_v17  ;;  %2348 = vrcp.f32 %v4144_v8  ;;  %v2208_v55 = vclamps-f32 %v4059_v21, 1.0 }
 0x210   : > { %v1527_v62 = vsel %vm4115_vm3, %v1526_v46, %v1522_v52  ;;  %v1558_v50 = vadd.f32 %v4074_v31, %v1557_v45  ;;  %vm1560_vm6 = vweird.f32 %v4074_v31  ;;  %v1655_v6 = vmul.f32 %v1654_v26, %v4110_v32 }
 0x211   : > { %v1565_v61 = vand.u32 2147483648, %v4036_v10  ;;  %v1596_v13 = vsub.f32 1.0, %v1595_v57  ;;  %v1667_v12 = vadd.f32 0.014752088, %v1666_v5  ;;  %v1911_v35 = vmul.f32 %v1895_v16, %v3680_v9  ;;  %vm4177_vm8 = vmor %vm1559_vm5, %vm1560_vm6 }
 0x212   : > { %vm4166_vm7 = vcmp.eq.f32.partialorder %v1563_v22, 8.507059e+37  ;;  %v1580_v21 = vadd.f32 0.18741608, %v1579_v56  ;;  %v1618_v60 = vadd.f32 0.05243302, %v1617_v59  ;;  %v4172_v25 = vmul.f32 %v4152_v20, %v2561_v28 }
 0x213   : > { %v1528_v49 = vmul.f32 %v1527_v62, %v4071_v41  ;;  %v1668_v9 = vmul.f32 %v1667_v12, %v4110_v32  ;;  %2213 = vmatmul.msk.f32.gmra.mxu2 %vm275_vm0, %v1911_v35  ;;  %v1906_v0 = vadd.f32 1.0, %v2208_v55  ;;  %v2198_v30 = vclamps-f32 %v1488_v15, 1.0 }
 0x214   : > { %v1562_v40 = vsel %vm4177_vm8, %v4074_v31, %v1558_v50  ;;  %v1597_v28 = vmul.f32 %v4146_v39, %v1596_v13  ;;  %v1656_v63 = vadd.f32 0.0036580483, %v1655_v6  ;;  %v1691_v10 = vmul.f32 %v4172_v25, %v4172_v25 }
 0x215   : > { %v4189_v41 = vpop.eup %2348  ;;  %v1566_v47 = vor.u32 1.1754944e-38, %v1565_v61  ;;  %v1669_v4 = vadd.f32 0.112945676, %v1668_v9  ;;  %v1922_v46 = vmul.f32 %v1906_v0, %v3783_v11  ;;  %v1896_v18 = vadd.f32 1.0, %v2198_v30 }
 0x216   : > { %v1581_v37 = vmul.f32 %v1580_v21, %v3970_v3  ;;  %v1619_v43 = vmul.f32 %v1618_v60, %v4019_v54  ;;  %v1635_v31 = vmul.f32 %v4189_v41, %v4144_v8  ;;  %v4196_v15 = vmin.f32 %v1691_v10, 16.0 }
 0x217   : > { %v1567_v45 = vsel %vm4166_vm7, %v1566_v47, %v1562_v40  ;;  %v1670_v7 = vmul.f32 %v1669_v4, %v4110_v32  ;;  %2224 = vmatmul.msk.f32.gmra.mxu3 %vm275_vm0, %v1922_v46  ;;  %v1912_v38 = vmul.f32 %v1896_v18, %v3850_v36  ;;  %v2199_v11 = vclamps-f32 %v1528_v49, 1.0 }
 0x218   : > { %v1598_v19 = vadd.f32 %v4146_v39, %v1597_v28  ;;  %vm1600_vm9 = vweird.f32 %v4146_v39  ;;  %v1657_v3 = vmul.f32 %v1656_v63, %v4110_v32  ;;  %v1693_v26 = vmul.f32 2.1237322e-06, %v4196_v15 }
 0x219   : > { %v1543_v42 = vmul.f32 %v4125_v33, %v3879_v27  ;;  %v1636_v51 = vsub.f32 1.0, %v1635_v31  ;;  %v1671_v58 = vadd.f32 0.4994258, %v1670_v7  ;;  %v1704_v52 = vmul.f32 3.8918573e-05, %v4196_v15 }
 0x21a   : > { %vm1599_vm10 = vweird.f32 %v4103_v17  ;;  %v1603_v36 = vand.u32 2147483647, %v4103_v17  ;;  %v1605_v22 = vand.u32 2147483648, %v4103_v17  ;;  %v1694_v56 = vadd.f32 0.00028619796, %v1693_v26 }
 0x21b   : > { %v1568_v59 = vmul.f32 %v1567_v45, %v1543_v42  ;;  %vm4213_vm11 = vmor %vm1599_vm10, %vm1600_vm9  ;;  %v1672_v16 = vmul.f32 %v1671_v58, %v4110_v32  ;;  %v1705_v57 = vadd.f32 0.001143296, %v1704_v52  ;;  %2214 = vmatmul.msk.f32.gmra.mxu2 %vm275_vm0, %v1912_v38  ;;  %v1897_v27 = vadd.f32 1.0, %v2199_v11 }
 0x21c   : > { %v1582_v33 = vadd.f32 1.1283791, %v1581_v37  ;;  %v1602_v55 = vsel %vm4213_vm11, %v4146_v39, %v1598_v19  ;;  %v1620_v62 = vadd.f32 0.18741608, %v1619_v43  ;;  %v1658_v50 = vadd.f32 0.05243302, %v1657_v3 }
 0x21d   : > { %v1637_v17 = vmul.f32 %v4189_v41, %v1636_v51  ;;  %v1673_v6 = vadd.f32 1.0, %v1672_v16  ;;  %v1695_v61 = vmul.f32 %v1694_v56, %v4196_v15  ;;  %v1706_v13 = vmul.f32 %v1705_v57, %v4196_v15 }
 0x21e   : > { %v1606_v12 = vor.u32 1.1754944e-38, %v1605_v22  ;;  %vm1604_vm12 = vcmp.eq.f32.partialorder %v1603_v36, 8.507059e+37  ;;  %v1913_v35 = vmul.f32 %v1897_v27, %v3917_v29  ;;  %v2200_v34 = vclamps-f32 %v1568_v59, 1.0 }
 0x21f   : > { %2350 = vrcp.f32 %v1673_v6  ;;  %v1583_v21 = vmul.f32 %v1582_v33, %v3946_v24  ;;  %v1621_v39 = vmul.f32 %v1620_v62, %v4019_v54  ;;  %v1707_v49 = vadd.f32 0.014752088, %v1706_v13 }
 0x220   : > { %v1607_v60 = vsel %vm1604_vm12, %v1606_v12, %v1602_v55  ;;  %v1638_v1 = vadd.f32 %v4189_v41, %v1637_v17  ;;  %vm1640_vm13 = vweird.f32 %v4189_v41  ;;  %v1659_v9 = vmul.f32 %v1658_v50, %v4110_v32 }
 0x221   : > { %v1696_v0 = vadd.f32 0.0036580483, %v1695_v61  ;;  %v1645_v30 = vand.u32 2147483648, %v4144_v8  ;;  %v1708_v40 = vmul.f32 %v1707_v49, %v4196_v15  ;;  %v1608_v28 = vmul.f32 %v1607_v60, %v1583_v21 }
 0x222   : > { %vm1639_vm14 = vweird.f32 %v4144_v8  ;;  %v1643_v29 = vand.u32 2147483647, %v4144_v8  ;;  %v1898_v24 = vadd.f32 1.0, %v2200_v34  ;;  %v1226_v54 = vmul.f32 0.5, %v3860_v23 }
 0x223   : > { %2215 = vmatmul.msk.f32.gmra.mxu2 %vm275_vm0, %v1913_v35  ;;  %vm1641_vm15 = vmor %vm1639_vm14, %vm1640_vm13  ;;  %v1709_v63 = vadd.f32 0.112945676, %v1708_v40  ;;  %v1622_v47 = vadd.f32 1.1283791, %v1621_v39  ;;  %v1660_v46 = vadd.f32 0.18741608, %v1659_v9  ;;  %v1697_v18 = vmul.f32 %v1696_v0, %v4196_v15 }
 0x224   : > { %v1642_v4 = vsel %vm1641_vm15, %v4189_v41, %v1638_v1  ;;  %v1646_v37 = vor.u32 1.1754944e-38, %v1645_v30  ;;  %vm1644_vm1 = vcmp.eq.f32.partialorder %v1643_v29, 8.507059e+37  ;;  %v1914_v8 = vmul.f32 %v1898_v24, %v1226_v54 }
 0x225   : > { %v2351_v10 = vpop.eup %2350  ;;  %v1710_v31 = vmul.f32 %v1709_v63, %v4196_v15  ;;  %v2201_v45 = vclamps-f32 %v1608_v28, 1.0  ;;  %v1623_v23 = vmul.f32 %v1622_v47, %v3987_v14  ;;  %v1661_v19 = vmul.f32 %v1660_v46, %v4110_v32 }
 0x226   : > { %v1675_v43 = vmul.f32 %v2351_v10, %v1673_v6  ;;  %v1647_v7 = vsel %vm1644_vm1, %v1646_v37, %v1642_v4  ;;  %v1698_v3 = vadd.f32 0.05243302, %v1697_v18  ;;  %vm1680_vm2 = vweird.f32 %v2351_v10 }
 0x227   : > { %v1711_v11 = vadd.f32 0.4994258, %v1710_v31  ;;  %v1685_v41 = vand.u32 2147483648, %v1673_v6  ;;  %v1648_v51 = vmul.f32 %v1647_v7, %v1623_v23  ;;  %v1683_v58 = vand.u32 2147483647, %v1673_v6 }
 0x228   : > { %v1676_v38 = vsub.f32 1.0, %v1675_v43  ;;  %v1899_v52 = vadd.f32 1.0, %v2201_v45  ;;  %vm1679_vm3 = vweird.f32 %v1673_v6  ;;  %v1227_v56 = vmul.f32 0.5, %v3928_v2 }
 0x229   : > { %v1712_v42 = vmul.f32 %v1711_v11, %v4196_v15  ;;  %v1662_v59 = vadd.f32 1.1283791, %v1661_v19  ;;  %vm1681_vm4 = vmor %vm1679_vm3, %vm1680_vm2  ;;  %v1699_v14 = vmul.f32 %v1698_v3, %v4196_v15  ;;  %v1686_v5 = vor.u32 1.1754944e-38, %v1685_v41 }
 0x22a   : > { %v1677_v26 = vmul.f32 %v2351_v10, %v1676_v38  ;;  %vm1684_vm5 = vcmp.eq.f32.partialorder %v1683_v58, 8.507059e+37  ;;  %v1915_v16 = vmul.f32 %v1899_v52, %v1227_v56  ;;  %v2202_v57 = vclamps-f32 %v1648_v51, 1.0 }
 0x22b   : > { %2216 = vmatmul.msk.f32.gmra.mxu2 %vm275_vm0, %v1914_v8  ;;  %v1713_v22 = vadd.f32 1.0, %v1712_v42  ;;  %v1663_v33 = vmul.f32 %v1662_v59, %v4080_v44  ;;  %v1700_v55 = vadd.f32 0.18741608, %v1699_v14  ;;  %v1228_v2 = vmul.f32 0.5, %v3953_v48 }
 0x22c   : > { %v1678_v36 = vadd.f32 %v2351_v10, %v1677_v26  ;;  %v1900_v50 = vadd.f32 1.0, %v2202_v57  ;;  %v1230_v24 = vmul.f32 0.5, %v4152_v20 }
 0x22d   : > { %2352 = vrcp.f32 %v1713_v22  ;;  %v1701_v6 = vmul.f32 %v1700_v55, %v4196_v15  ;;  %v1725_v34 = vand.u32 2147483648, %v1713_v22  ;;  %v1723_v39 = vand.u32 2147483647, %v1713_v22 }
 0x22e   : > { %v1682_v32 = vsel %vm1681_vm4, %v2351_v10, %v1678_v36  ;;  %v1916_v12 = vmul.f32 %v1900_v50, %v1228_v2  ;;  %vm1719_vm7 = vweird.f32 %v1713_v22  ;;  %v1229_v15 = vmul.f32 0.5, %v4057_v53  ;;  %v2287_v53 = vld [vmem:[%s4319_s5] ss:$0 sm:$0xff] }
 0x22f   : > { %v1687_v27 = vsel %vm1684_vm5, %v1686_v5, %v1682_v32  ;;  %v1702_v21 = vadd.f32 1.1283791, %v1701_v6  ;;  %v1726_v48 = vor.u32 1.1754944e-38, %v1725_v34  ;;  %vm1724_vm9 = vcmp.eq.f32.partialorder %v1723_v39, 8.507059e+37 }
 0x230   : > { %v1688_v62 = vmul.f32 %v1687_v27, %v1663_v33 }
 0x231   : > { %v1703_v1 = vmul.f32 %v1702_v21, %v4172_v25 }
 0x232   : > { %v2203_v35 = vclamps-f32 %v1688_v62, 1.0 }
 0x233   : > { %2217 = vmatmul.msk.f32.gmra.mxu2 %vm275_vm0, %v1915_v16  ;;  %v2353_v17 = vpop.eup %2352 }
 0x234   : > { %v1715_v61 = vmul.f32 %v2353_v17, %v1713_v22  ;;  %vm1720_vm6 = vweird.f32 %v2353_v17  ;;  %v1901_v49 = vadd.f32 1.0, %v2203_v35 }
 0x235   : > { %vm1721_vm8 = vmor %vm1719_vm7, %vm1720_vm6 }
 0x236   : > { %v1716_v13 = vsub.f32 1.0, %v1715_v61  ;;  %v1917_v40 = vmul.f32 %v1901_v49, %v1229_v15 }
 0x238   : > { %v1717_v60 = vmul.f32 %v2353_v17, %v1716_v13 }
 0x23a   : > { %v1718_v44 = vadd.f32 %v2353_v17, %v1717_v60 }
 0x23b   : > { %2218 = vmatmul.msk.f32.gmra.mxu2 %vm275_vm0, %v1916_v12  ;;  %v2032_v25 = vpop.f32.mrf.mxu3 }
 0x23c   : > { %v1722_v9 = vsel %vm1721_vm8, %v2353_v17, %v1718_v44  ;;  %v2033_v63 = vadd.f32 %v2287_v53, %v2032_v25 }
 0x23d   : > { %v1727_v0 = vsel %vm1724_vm9, %v1726_v48, %v1722_v9 }
 0x23e   : > { %v1728_v30 = vmul.f32 %v1727_v0, %v1703_v1  ;;  %2056 = vst [vmem:[%s4262_s20 + $0x60] sm:$0xff] %v2033_v63 }
 0x240   : > { %v2204_v28 = vclamps-f32 %v1728_v30, 1.0 }
 0x242   : > { %v1902_v29 = vadd.f32 1.0, %v2204_v28 }
 0x243   : > { %2219 = vmatmul.msk.f32.gmra.mxu2 %vm275_vm0, %v1917_v40 }
 0x244   : > { %v1918_v54 = vmul.f32 %v1902_v29, %v1230_v24 }
 0x24b   : > { %2220 = vmatmul.msk.f32.gmra.mxu2 %vm275_vm0, %v1918_v54 }
 0x25e   : > { %v1996_v20 = vpop.f32.mrf.mxu2 }
 0x25f   : > { %v1997_v10 = vadd.f32 %v2287_v53, %v1996_v20 }
 0x261   : > { %2044 = vst [vmem:[%s4262_s20] sm:$0xff] %v1997_v10 }
 0x26b   : > { %v1999_v47 = vpop.f32.mrf.mxu2 }
 0x26c   : > { %v2000_v4 = vadd.f32 %v2287_v53, %v1999_v47 }
 0x26e   : > { %2045 = vst [vmem:[%s4262_s20 + $0x8] sm:$0xff] %v2000_v4 }
 0x275   : > { %v2002_v46 = vpop.f32.mrf.mxu2 }
 0x276   : > { %v2003_v18 = vadd.f32 %v2287_v53, %v2002_v46 }
 0x278   : > { %2046 = vst [vmem:[%s4262_s20 + $0x10] sm:$0xff] %v2003_v18 }
 0x285   : > { %v2035_v37 = vpop.f32.mrf.mxu3 }
 0x286   : > { %v2036_v43 = vadd.f32 %v2287_v53, %v2035_v37 }
 0x288   : > { %2057 = vst [vmem:[%s4262_s20 + $0x68] sm:$0xff] %v2036_v43 }
 0x28c   : > { %v2005_v31 = vpop.f32.mrf.mxu2 }
 0x28d   : > { %v2006_v8 = vadd.f32 %v2287_v53, %v2005_v31 }
 0x28f   : > { %2047 = vst [vmem:[%s4262_s20 + $0x18] sm:$0xff] %v2006_v8 }
 0x291   : > { %v2038_v45 = vpop.f32.mrf.mxu3 }
 0x292   : > { %v2039_v7 = vadd.f32 %v2287_v53, %v2038_v45 }
 0x294   : > { %2058 = vst [vmem:[%s4262_s20 + $0x70] sm:$0xff] %v2039_v7 }
 0x296   : > { %v2008_v38 = vpop.f32.mrf.mxu2 }
 0x297   : > { %v2009_v11 = vadd.f32 %v2287_v53, %v2008_v38 }
 0x299   : > { %2048 = vst [vmem:[%s4262_s20 + $0x20] sm:$0xff] %v2009_v11 }
 0x29a   : > { %v2041_v23 = vpop.f32.mrf.mxu3 }
 0x29b   : > { %v2042_v19 = vadd.f32 %v2287_v53, %v2041_v23 }
 0x29d   : > { %2059 = vst [vmem:[%s4262_s20 + $0x78] sm:$0xff] %v2042_v19 }
 0x29e   : > { %v2011_v3 = vpop.f32.mrf.mxu2 }
 0x29f   : > { %v2012_v26 = vadd.f32 %v2287_v53, %v2011_v3 }
 0x2a1   : > { %2049 = vst [vmem:[%s4262_s20 + $0x28] sm:$0xff] %v2012_v26 }
 0x2a6   : > { %v2014_v41 = vpop.f32.mrf.mxu2 }
 0x2a7   : > { %v2015_v42 = vadd.f32 %v2287_v53, %v2014_v41 }
 0x2a9   : > { %2050 = vst [vmem:[%s4262_s20 + $0x30] sm:$0xff] %v2015_v42 }
 0x2ae   : > { %v2017_v51 = vpop.f32.mrf.mxu2 }
 0x2af   : > { %v2018_v58 = vadd.f32 %v2287_v53, %v2017_v51 }
 0x2b1   : > { %2051 = vst [vmem:[%s4262_s20 + $0x38] sm:$0xff] %v2018_v58 }
 0x2b6   : > { %v2020_v52 = vpop.f32.mrf.mxu2 }
 0x2b7   : > { %v2021_v36 = vadd.f32 %v2287_v53, %v2020_v52 }
 0x2b9   : > { %2052 = vst [vmem:[%s4262_s20 + $0x40] sm:$0xff] %v2021_v36 }
 0x2be   : > { %v2023_v22 = vpop.f32.mrf.mxu2 }
 0x2bf   : > { %v2024_v56 = vadd.f32 %v2287_v53, %v2023_v22 }
 0x2c1   : > { %2053 = vst [vmem:[%s4262_s20 + $0x48] sm:$0xff] %v2024_v56 }
 0x2c6   : > { %v2026_v59 = vpop.f32.mrf.mxu2 }
 0x2c7   : > { %v2027_v14 = vadd.f32 %v2287_v53, %v2026_v59 }
 0x2c9   : > { %2054 = vst [vmem:[%s4262_s20 + $0x50] sm:$0xff] %v2027_v14 }
 0x2ce   : > { %v2029_v32 = vpop.f32.mrf.mxu2 }
 0x2cf   : > { %v2030_v5 = vadd.f32 %v2287_v53, %v2029_v32 }
 0x2d1   : > { %2055 = vst [vmem:[%s4262_s20 + $0x58] sm:$0xff] %v2030_v5 }
 0x2d2   : > { %2383 = shalt.err (!%p2380_p3)
}
 0x2d3   : > { %s2421_s16 = smov 128   ;;  %s2422_s20 = smov 8  }
 0x2d4   : > { %2243 = dma.vmem_to_hbm [thread:$0]  (%p2496_p5), %s2074_s10, 2048, %s2076_s11, %s2061_s12, %s2421_s16, %s2421_s16, %s2422_s20  }
 0x2d5 PF: > { %p2249_p4 = scmp.ge.s32.totalorder %s2418_s24, 2  ;;  %s2090_s26 = sand.u32 1, %s2406_s21  }
 0x2d6   : > { %s2091_s28 = scalar_lea.sflag [#allocation3], %s2090_s26 }
 0x2d7   : > { %p2246_p7 = pnand %p2249_p4, %p2500_p6 }
 0x2d9   : > { %p2247_p8 = pneg %p2246_p7 }
 0x2db   : > { %2401 = dma.done.wait (%p2247_p8), %s2091_s28, 2048  }
 0x2dc   : > { %2403 = vsyncadd (%p2247_p8), %s2091_s28, 4294965248  ;;  %p16_p9 = scmp.ge.s32.totalorder %s2483_s27, 4   ;;  %s4417_s21 = smov %s2410_s22 }
 0x2dd   : > { %s4418_s22 = smov %s2414_s23  ;;  %s4419_s23 = smov %s2494_s30 }
 0x2de   : > { %s4420_s24 = smov %s2483_s27  ;;  %18 = sbr.rel (!%p16_p9) target bundleno = 3 (0x3), region = 79 }
 0x2e3   :  { %2097 = vsyncpa [#allocation3], 1 }
 0x2e4   :  { %2099 = vsyncpa [#allocation3 + $0x1], 1 }

</bundles_post_ra>
